<compile_context>
chip_gen: v5e
topology: v5e:2x2
jax: 0.10.0
libtpu: 0.0.40
codegen_flags: <defaults>
</compile_context>

<pallas_src>
import jax
import jax.numpy as jnp
from jax.experimental import pallas as pl
from jax.experimental.pallas import tpu as pltpu


LEVELS = 3
LEVEL_CHANNELS = (16, 32, 64)
IM_SIZE = (16, 16)
PROJ_CHUNK = 2048  # points per one-hot projection tile (bounds VMEM at large N)


def _make_fused_kernel(N, Cin, H0, W0, G):
    """Fused forward for G batch elements per grid step."""
    HW0 = H0 * W0
    C0, C1, C2 = LEVEL_CHANNELS

    def kernel(t_ref, kp_ref,
               px0_ref, pr0_ref, px1_ref, pr1_ref, px2_ref, pr2_ref,
               w0a_ref, w0b_ref, b0_ref, w1_ref, b1_ref, w2_ref, b2_ref,
               wd0_ref, wd1_ref, wd2_ref, bd_ref, up1_ref, up2_ref,
               out_ref, img0_ref, img1_ref, img2_ref):
        step = pl.program_id(0)

        for g in range(G):                      # static unroll over batch fold
            b = step * G + g
            t = [t_ref[b, j] for j in range(12)]
            fx = kp_ref[b, 0]
            fy = kp_ref[b, 1]
            cx = kp_ref[b, 2]
            cy = kp_ref[b, 3]

            def transform(x, y, z):
                # geo.transform3Dto3D: 3x4 entries as SMEM scalars, lane-dense
                # FMAs over the point (lane) axis.
                return (t[0] * x + t[1] * y + t[2] * z + t[3],
                        t[4] * x + t[5] * y + t[6] * z + t[7],
                        t[8] * x + t[9] * y + t[10] * z + t[11])

            def encode0(xyz_ref, rest_ref):
                # Level-0 shared point MLP on [T(xyz); rest] -> (C0, Nl).
                x = xyz_ref[g, 0:1, :]
                y = xyz_ref[g, 1:2, :]
                z = xyz_ref[g, 2:3, :]
                tx, ty, tz = transform(x, y, z)
                pt3 = jnp.concatenate([tx, ty, tz], axis=0)        # (3, Nl)
                z0 = (jnp.dot(w0a_ref[...], pt3,
                              preferred_element_type=jnp.float32)
                      + jnp.dot(w0b_ref[...], rest_ref[g],
                                preferred_element_type=jnp.float32)
                      + b0_ref[...])
                return jnp.maximum(z0, 0.0), (tx, ty, tz)

            def project(pt, feats, level):
                # geo.projectPointFeature2Image: pinhole projection (img_k =
                # K / (1<<level)) + scatter-ADD of per-point features via an
                # N-chunked bf16 one-hot contraction (0/1 exact in bf16).
                Hi, Wi = H0 >> level, W0 >> level
                HWi = Hi * Wi
                inv = 1.0 / float(1 << level)
                qx, qy, qz = transform(*pt)        # reference re-applies T
                eps = 1e-6
                z_safe = jnp.where(jnp.abs(qz) > eps, qz, eps)
                rcp = pl.reciprocal(z_safe, approx=True)   # EUP, off VALU path
                u = (fx * inv) * qx * rcp + (cx * inv)
                v = (fy * inv) * qy * rcp + (cy * inv)
                u = jnp.clip(u, -1.0, float(Wi))   # keep the int cast in range
                v = jnp.clip(v, -1.0, float(Hi))
                ui = jnp.floor(u).astype(jnp.int32)
                vi = jnp.floor(v).astype(jnp.int32)
                valid = ((qz > eps) & (ui >= 0) & (ui < Wi)
                         & (vi >= 0) & (vi < Hi))
                idx = jnp.where(valid, vi * Wi + ui, -1)   # (1, Nl), -1 = drop
                feats_bf = feats.astype(jnp.bfloat16)
                Nl = feats.shape[1]
                img = jnp.zeros((feats.shape[0], HWi), jnp.float32)
                for c in range(0, Nl, PROJ_CHUNK):         # bounded VMEM tile
                    nt = min(PROJ_CHUNK, Nl - c)
                    pix = jax.lax.broadcasted_iota(jnp.int32, (HWi, nt), 0)
                    onehot_t = (pix == idx[:, c:c + nt]).astype(jnp.bfloat16)
                    img = img + jax.lax.dot_general(
                        feats_bf[:, c:c + nt], onehot_t,
                        (((1,), (1,)), ((), ())),          # contract N: A @ B^T
                        preferred_element_type=jnp.float32)
                return img

            # --- PtEncoder stand-in: 3-level shared MLP; levels 1/2 are
            # re-encoded from host-strided point subsets (identical results for
            # a pointwise MLP; avoids O(N^2) selection matrices / permutes). --
            f0, pt0 = encode0(px0_ref, pr0_ref)                      # (C0, N)
            f1a, pt1 = encode0(px1_ref, pr1_ref)                     # (C0, N/2)
            f1 = jnp.maximum(
                jnp.dot(w1_ref[...], f1a, preferred_element_type=jnp.float32)
                + b1_ref[...], 0.0)                                  # (C1, N/2)
            f2a, pt2 = encode0(px2_ref, pr2_ref)                     # (C0, N/4)
            f2b = jnp.maximum(
                jnp.dot(w1_ref[...], f2a, preferred_element_type=jnp.float32)
                + b1_ref[...], 0.0)
            f2 = jnp.maximum(
                jnp.dot(w2_ref[...], f2b, preferred_element_type=jnp.float32)
                + b2_ref[...], 0.0)                                  # (C2, N/4)

            img0 = project(pt0, f0, 0)                               # (C0, 256)
            img1 = project(pt1, f1, 1)                               # (C1, 64)
            img2 = project(pt2, f2, 2)                               # (C2, 16)

            img0_ref[g] = img0
            img1_ref[g] = img1
            img2_ref[g] = img2

            # --- ImgDecoder stand-in: per-level 1x1 conv + nearest upsample
            # (host-precomputed bf16 one-hots) + tanh; output is (3, HW0),
            # lane-dense. -----------------------------------------------------
            y0 = jnp.dot(wd0_ref[...], img0, preferred_element_type=jnp.float32)
            y1 = jnp.dot(wd1_ref[...], img1, preferred_element_type=jnp.float32)
            y2 = jnp.dot(wd2_ref[...], img2, preferred_element_type=jnp.float32)
            dec = (y0
                   + jnp.dot(y1.astype(jnp.bfloat16), up1_ref[...],
                             preferred_element_type=jnp.float32)
                   + jnp.dot(y2.astype(jnp.bfloat16), up2_ref[...],
                             preferred_element_type=jnp.float32)
                   + bd_ref[...])
            out_ref[g] = jnp.tanh(dec)

    return kernel


def _upsample_onehot(level, H0, W0):
    """(H_l*W_l, H0*W0) nearest-neighbour upsample one-hot (exact in bf16)."""
    Hi, Wi = H0 >> level, W0 >> level
    f = 1 << level
    p = jnp.arange(H0 * W0, dtype=jnp.int32)
    src = (p // W0 // f) * Wi + (p % W0) // f
    tgt = jnp.arange(Hi * Wi, dtype=jnp.int32)
    return (tgt[:, None] == src[None, :]).astype(jnp.bfloat16)


def point2image_forward(params, ptc, T, K, *, batch_block=1):
    """ptc: (B, Cin>=4, N) NCL (PyTorch layout), T: (B, 4, 4), K: (B, 3, 3).

    Returns (outputs NCHW (B, 3, H, W), [img_tensor_i NCHW (B, C_i, H_i, W_i)]).
    batch_block=G processes G batch elements per grid step (use G>1 / G=B on
    single-TensorCore v5e/v6e; keep B/G >= 2 on v7x so both cores stay busy).
    """
    B, Cin, N = ptc.shape
    H0, W0 = IM_SIZE
    HW0 = H0 * W0
    C0, C1, C2 = LEVEL_CHANNELS
    G = batch_block
    assert Cin > 3, "need xyz plus at least one extra point channel"
    assert N % 4 == 0, "N must be divisible by 4 (two stride-2 levels)"
    assert B % G == 0
    assert params["W"][0].shape[1] == Cin

    # Boundary-only XLA glue: scalar tables, free strided point subsets,
    # constant upsample one-hots.  No transpose of the point cloud.
    pc = ptc.astype(jnp.float32)                                    # (B, Cin, N)
    pc1 = pc[:, :, ::2]                                             # (B, Cin, N/2)
    pc2 = pc[:, :, ::4]                                             # (B, Cin, N/4)
    T_flat = T[:, :3, :].reshape(B, 12).astype(jnp.float32)         # (B, 12)
    kp = jnp.stack([K[:, 0, 0], K[:, 1, 1], K[:, 0, 2], K[:, 1, 2]],
                   axis=-1).astype(jnp.float32)                     # (B, 4)
    up1 = _upsample_onehot(1, H0, W0)                               # (64, 256) bf16
    up2 = _upsample_onehot(2, H0, W0)                               # (16, 256) bf16
    w0 = params["W"][0]
    w0a, w0b = w0[:, :3], w0[:, 3:]                                 # pre-split

    smem = pl.BlockSpec(memory_space=pltpu.MemorySpace.SMEM)

    def batch_spec(c, n):
        return pl.BlockSpec((G, c, n), lambda i: (i, 0, 0))

    def const_spec(r, c):
        return pl.BlockSpec((r, c), lambda i: (0, 0))

    in_specs = [
        smem, smem,                                                  # T, K params
        batch_spec(3, N), batch_spec(Cin - 3, N),                    # level 0 pts
        batch_spec(3, N // 2), batch_spec(Cin - 3, N // 2),          # level 1 pts
        batch_spec(3, N // 4), batch_spec(Cin - 3, N // 4),          # level 2 pts
        const_spec(C0, 3), const_spec(C0, Cin - 3), const_spec(C0, 1),
        const_spec(C1, C0), const_spec(C1, 1),
        const_spec(C2, C1), const_spec(C2, 1),
        const_spec(3, C0), const_spec(3, C1), const_spec(3, C2), const_spec(3, 1),
        const_spec(HW0 // 4, HW0), const_spec(HW0 // 16, HW0),
    ]
    out_specs = (
        pl.BlockSpec((G, 3, HW0), lambda i: (i, 0, 0)),
        pl.BlockSpec((G, C0, HW0), lambda i: (i, 0, 0)),
        pl.BlockSpec((G, C1, HW0 // 4), lambda i: (i, 0, 0)),
        pl.BlockSpec((G, C2, HW0 // 16), lambda i: (i, 0, 0)),
    )
    out_shape = (
        jax.ShapeDtypeStruct((B, 3, HW0), jnp.float32),
        jax.ShapeDtypeStruct((B, C0, HW0), jnp.float32),
        jax.ShapeDtypeStruct((B, C1, HW0 // 4), jnp.float32),
        jax.ShapeDtypeStruct((B, C2, HW0 // 16), jnp.float32),
    )

    out, i0, i1, i2 = pl.pallas_call(
        _make_fused_kernel(N, Cin, H0, W0, G),
        out_shape=out_shape,
        grid=(B // G,),
        in_specs=in_specs,
        out_specs=out_specs,
        compiler_params=pltpu.CompilerParams(
            dimension_semantics=("parallel",)),
    )(T_flat, kp,
      pc[:, :3, :], pc[:, 3:, :],
      pc1[:, :3, :], pc1[:, 3:, :],
      pc2[:, :3, :], pc2[:, 3:, :],
      w0a, w0b, params["b"][0],
      params["W"][1], params["b"][1],
      params["W"][2], params["b"][2],
      params["Wd"][0], params["Wd"][1], params["Wd"][2], params["bd"],
      up1, up2)

    # Channels-first kernel outputs -> NCHW needs only reshapes (no transpose).
    outputs = out.reshape(B, 3, H0, W0)
    img_tensor = [i0.reshape(B, C0, H0, W0),
                  i1.reshape(B, C1, H0 // 2, W0 // 2),
                  i2.reshape(B, C2, H0 // 4, W0 // 4)]
    return outputs, img_tensor


def init_params():
    key = jax.random.PRNGKey(0)
    ks = jax.random.split(key, 9)
    in_ch = (6,) + LEVEL_CHANNELS[:-1]                       # (6, 16, 32)
    # Channels-first weights: encoder W_i (Cout_i, Cin_i), decoder Wd_i (3, C_i).
    W = [0.1 * jax.random.normal(ks[i], (LEVEL_CHANNELS[i], in_ch[i]),
                                 jnp.float32) for i in range(LEVELS)]
    b = [0.01 * jax.random.normal(ks[3 + i], (LEVEL_CHANNELS[i], 1),
                                  jnp.float32) for i in range(LEVELS)]
    Wd = [0.1 * jax.random.normal(ks[6 + i], (3, LEVEL_CHANNELS[i]),
                                  jnp.float32) for i in range(LEVELS)]
    bd = jnp.zeros((3, 1), jnp.float32)
    return {"W": W, "b": b, "Wd": Wd, "bd": bd}


if __name__ == "__main__":
    B, N, C_in = 2, 32, 6
    H0, W0 = IM_SIZE

    key = jax.random.PRNGKey(0)
    k1, k2, k3 = jax.random.split(key, 3)
    # points: xy in [-1, 1], z in [2, 4] so most project inside the image
    xy = jax.random.uniform(k1, (B, 2, N), minval=-1.0, maxval=1.0)
    z = jax.random.uniform(k2, (B, 1, N), minval=2.0, maxval=4.0)
    extra = jax.random.normal(k3, (B, C_in - 3, N), jnp.float32)
    ptc = jnp.concatenate([xy, z, extra], axis=1).astype(jnp.float32)  # (B, 6, N)

    T = jnp.tile(jnp.eye(4, dtype=jnp.float32)[None], (B, 1, 1))
    T = T.at[:, :3, 3].set(jnp.array([0.1, -0.1, 0.2], jnp.float32))
    K = jnp.tile(jnp.array([[8.0, 0.0, 8.0],
                            [0.0, 8.0, 8.0],
                            [0.0, 0.0, 1.0]], jnp.float32)[None], (B, 1, 1))

    params = init_params()
    fwd = jax.jit(point2image_forward)
    outputs, img_tensor = fwd(params, ptc, T, K)
    jax.block_until_ready(outputs)
    jax.block_until_ready(img_tensor)

    assert outputs.shape == (B, 3, H0, W0)
    assert [t.shape for t in img_tensor] == [
        (B, LEVEL_CHANNELS[i], H0 >> i, W0 >> i) for i in range(LEVELS)]
    assert bool(jnp.all(jnp.isfinite(outputs)))
    print("KERNEL_OK")
</pallas_src>

<mosaic_0001>
module attributes {stable_mosaic.version = 11 : i64} {
  func.func @kernel(%arg0: i32, %arg1: memref<2x12xf32, #tpu.memory_space<smem>>, %arg2: memref<2x4xf32, #tpu.memory_space<smem>>, %arg3: memref<1x3x32xf32, #tpu.memory_space<vmem>>, %arg4: memref<1x3x32xf32, #tpu.memory_space<vmem>>, %arg5: memref<1x3x16xf32, #tpu.memory_space<vmem>>, %arg6: memref<1x3x16xf32, #tpu.memory_space<vmem>>, %arg7: memref<1x3x8xf32, #tpu.memory_space<vmem>>, %arg8: memref<1x3x8xf32, #tpu.memory_space<vmem>>, %arg9: memref<16x3xf32, #tpu.memory_space<vmem>>, %arg10: memref<16x3xf32, #tpu.memory_space<vmem>>, %arg11: memref<16x1xf32, #tpu.memory_space<vmem>>, %arg12: memref<32x16xf32, #tpu.memory_space<vmem>>, %arg13: memref<32x1xf32, #tpu.memory_space<vmem>>, %arg14: memref<64x32xf32, #tpu.memory_space<vmem>>, %arg15: memref<64x1xf32, #tpu.memory_space<vmem>>, %arg16: memref<3x16xf32, #tpu.memory_space<vmem>>, %arg17: memref<3x32xf32, #tpu.memory_space<vmem>>, %arg18: memref<3x64xf32, #tpu.memory_space<vmem>>, %arg19: memref<3x1xf32, #tpu.memory_space<vmem>>, %arg20: memref<64x256xbf16, #tpu.memory_space<vmem>>, %arg21: memref<16x256xbf16, #tpu.memory_space<vmem>>, %arg22: memref<1x3x256xf32, #tpu.memory_space<vmem>>, %arg23: memref<1x16x256xf32, #tpu.memory_space<vmem>>, %arg24: memref<1x32x64xf32, #tpu.memory_space<vmem>>, %arg25: memref<1x64x16xf32, #tpu.memory_space<vmem>>) attributes {dimension_semantics = [#tpu.dimension_semantics<parallel>], iteration_bounds = array<i64: 2>, scalar_prefetch = 0 : i64, scratch_operands = 0 : i64, tpu.core_type = #tpu.core_type<tc>, window_params = [{transform_indices = @transform_0, window_bounds = array<i64: 2, 12>}, {transform_indices = @transform_1, window_bounds = array<i64: 2, 4>}, {transform_indices = @transform_2, window_bounds = array<i64: 1, 3, 32>}, {transform_indices = @transform_3, window_bounds = array<i64: 1, 3, 32>}, {transform_indices = @transform_4, window_bounds = array<i64: 1, 3, 16>}, {transform_indices = @transform_5, window_bounds = array<i64: 1, 3, 16>}, {transform_indices = @transform_6, window_bounds = array<i64: 1, 3, 8>}, {transform_indices = @transform_7, window_bounds = array<i64: 1, 3, 8>}, {pipeline_mode = #tpu.pipeline_mode<synchronous>, transform_indices = @transform_8, window_bounds = array<i64: 16, 3>}, {pipeline_mode = #tpu.pipeline_mode<synchronous>, transform_indices = @transform_9, window_bounds = array<i64: 16, 3>}, {pipeline_mode = #tpu.pipeline_mode<synchronous>, transform_indices = @transform_10, window_bounds = array<i64: 16, 1>}, {pipeline_mode = #tpu.pipeline_mode<synchronous>, transform_indices = @transform_11, window_bounds = array<i64: 32, 16>}, {pipeline_mode = #tpu.pipeline_mode<synchronous>, transform_indices = @transform_12, window_bounds = array<i64: 32, 1>}, {pipeline_mode = #tpu.pipeline_mode<synchronous>, transform_indices = @transform_13, window_bounds = array<i64: 64, 32>}, {pipeline_mode = #tpu.pipeline_mode<synchronous>, transform_indices = @transform_14, window_bounds = array<i64: 64, 1>}, {pipeline_mode = #tpu.pipeline_mode<synchronous>, transform_indices = @transform_15, window_bounds = array<i64: 3, 16>}, {pipeline_mode = #tpu.pipeline_mode<synchronous>, transform_indices = @transform_16, window_bounds = array<i64: 3, 32>}, {pipeline_mode = #tpu.pipeline_mode<synchronous>, transform_indices = @transform_17, window_bounds = array<i64: 3, 64>}, {pipeline_mode = #tpu.pipeline_mode<synchronous>, transform_indices = @transform_18, window_bounds = array<i64: 3, 1>}, {pipeline_mode = #tpu.pipeline_mode<synchronous>, transform_indices = @transform_19, window_bounds = array<i64: 64, 256>}, {pipeline_mode = #tpu.pipeline_mode<synchronous>, transform_indices = @transform_20, window_bounds = array<i64: 16, 256>}, {transform_indices = @transform_21, window_bounds = array<i64: 1, 3, 256>}, {transform_indices = @transform_22, window_bounds = array<i64: 1, 16, 256>}, {transform_indices = @transform_23, window_bounds = array<i64: 1, 32, 64>}, {transform_indices = @transform_24, window_bounds = array<i64: 1, 64, 16>}]} {
    %c1_i32 = arith.constant 1 : i32
    %0 = arith.muli %arg0, %c1_i32 : i32
    %c0_i32 = arith.constant 0 : i32
    %1 = arith.addi %0, %c0_i32 : i32
    %2 = arith.index_cast %1 : i32 to index
    %c0 = arith.constant 0 : index
    %3 = memref.load %arg1[%2, %c0] : memref<2x12xf32, #tpu.memory_space<smem>>
    %4 = arith.index_cast %1 : i32 to index
    %c1 = arith.constant 1 : index
    %5 = memref.load %arg1[%4, %c1] : memref<2x12xf32, #tpu.memory_space<smem>>
    %6 = arith.index_cast %1 : i32 to index
    %c2 = arith.constant 2 : index
    %7 = memref.load %arg1[%6, %c2] : memref<2x12xf32, #tpu.memory_space<smem>>
    %8 = arith.index_cast %1 : i32 to index
    %c3 = arith.constant 3 : index
    %9 = memref.load %arg1[%8, %c3] : memref<2x12xf32, #tpu.memory_space<smem>>
    %10 = arith.index_cast %1 : i32 to index
    %c4 = arith.constant 4 : index
    %11 = memref.load %arg1[%10, %c4] : memref<2x12xf32, #tpu.memory_space<smem>>
    %12 = arith.index_cast %1 : i32 to index
    %c5 = arith.constant 5 : index
    %13 = memref.load %arg1[%12, %c5] : memref<2x12xf32, #tpu.memory_space<smem>>
    %14 = arith.index_cast %1 : i32 to index
    %c6 = arith.constant 6 : index
    %15 = memref.load %arg1[%14, %c6] : memref<2x12xf32, #tpu.memory_space<smem>>
    %16 = arith.index_cast %1 : i32 to index
    %c7 = arith.constant 7 : index
    %17 = memref.load %arg1[%16, %c7] : memref<2x12xf32, #tpu.memory_space<smem>>
    %18 = arith.index_cast %1 : i32 to index
    %c8 = arith.constant 8 : index
    %19 = memref.load %arg1[%18, %c8] : memref<2x12xf32, #tpu.memory_space<smem>>
    %20 = arith.index_cast %1 : i32 to index
    %c9 = arith.constant 9 : index
    %21 = memref.load %arg1[%20, %c9] : memref<2x12xf32, #tpu.memory_space<smem>>
    %22 = arith.index_cast %1 : i32 to index
    %c10 = arith.constant 10 : index
    %23 = memref.load %arg1[%22, %c10] : memref<2x12xf32, #tpu.memory_space<smem>>
    %24 = arith.index_cast %1 : i32 to index
    %c11 = arith.constant 11 : index
    %25 = memref.load %arg1[%24, %c11] : memref<2x12xf32, #tpu.memory_space<smem>>
    %26 = arith.index_cast %1 : i32 to index
    %c0_0 = arith.constant 0 : index
    %27 = memref.load %arg2[%26, %c0_0] : memref<2x4xf32, #tpu.memory_space<smem>>
    %28 = arith.index_cast %1 : i32 to index
    %c1_1 = arith.constant 1 : index
    %29 = memref.load %arg2[%28, %c1_1] : memref<2x4xf32, #tpu.memory_space<smem>>
    %30 = arith.index_cast %1 : i32 to index
    %c2_2 = arith.constant 2 : index
    %31 = memref.load %arg2[%30, %c2_2] : memref<2x4xf32, #tpu.memory_space<smem>>
    %32 = arith.index_cast %1 : i32 to index
    %c3_3 = arith.constant 3 : index
    %33 = memref.load %arg2[%32, %c3_3] : memref<2x4xf32, #tpu.memory_space<smem>>
    %c0_4 = arith.constant 0 : index
    %c0_5 = arith.constant 0 : index
    %c0_6 = arith.constant 0 : index
    %34 = vector.load %arg3[%c0_4, %c0_5, %c0_6] : memref<1x3x32xf32, #tpu.memory_space<vmem>>, vector<1x1x32xf32>
    %35 = vector.shape_cast %34 : vector<1x1x32xf32> to vector<1x32xf32>
    %c0_7 = arith.constant 0 : index
    %c1_8 = arith.constant 1 : index
    %c0_9 = arith.constant 0 : index
    %36 = vector.load %arg3[%c0_7, %c1_8, %c0_9] : memref<1x3x32xf32, #tpu.memory_space<vmem>>, vector<1x1x32xf32>
    %37 = vector.shape_cast %36 : vector<1x1x32xf32> to vector<1x32xf32>
    %c0_10 = arith.constant 0 : index
    %c2_11 = arith.constant 2 : index
    %c0_12 = arith.constant 0 : index
    %38 = vector.load %arg3[%c0_10, %c2_11, %c0_12] : memref<1x3x32xf32, #tpu.memory_space<vmem>>, vector<1x1x32xf32>
    %39 = vector.shape_cast %38 : vector<1x1x32xf32> to vector<1x32xf32>
    %40 = vector.broadcast %3 : f32 to vector<1x32xf32>
    %41 = arith.mulf %40, %35 : vector<1x32xf32>
    %42 = vector.broadcast %5 : f32 to vector<1x32xf32>
    %43 = arith.mulf %42, %37 : vector<1x32xf32>
    %44 = arith.addf %41, %43 : vector<1x32xf32>
    %45 = vector.broadcast %7 : f32 to vector<1x32xf32>
    %46 = arith.mulf %45, %39 : vector<1x32xf32>
    %47 = arith.addf %44, %46 : vector<1x32xf32>
    %48 = vector.broadcast %9 : f32 to vector<1x32xf32>
    %49 = arith.addf %47, %48 : vector<1x32xf32>
    %50 = vector.broadcast %11 : f32 to vector<1x32xf32>
    %51 = arith.mulf %50, %35 : vector<1x32xf32>
    %52 = vector.broadcast %13 : f32 to vector<1x32xf32>
    %53 = arith.mulf %52, %37 : vector<1x32xf32>
    %54 = arith.addf %51, %53 : vector<1x32xf32>
    %55 = vector.broadcast %15 : f32 to vector<1x32xf32>
    %56 = arith.mulf %55, %39 : vector<1x32xf32>
    %57 = arith.addf %54, %56 : vector<1x32xf32>
    %58 = vector.broadcast %17 : f32 to vector<1x32xf32>
    %59 = arith.addf %57, %58 : vector<1x32xf32>
    %60 = vector.broadcast %19 : f32 to vector<1x32xf32>
    %61 = arith.mulf %60, %35 : vector<1x32xf32>
    %62 = vector.broadcast %21 : f32 to vector<1x32xf32>
    %63 = arith.mulf %62, %37 : vector<1x32xf32>
    %64 = arith.addf %61, %63 : vector<1x32xf32>
    %65 = vector.broadcast %23 : f32 to vector<1x32xf32>
    %66 = arith.mulf %65, %39 : vector<1x32xf32>
    %67 = arith.addf %64, %66 : vector<1x32xf32>
    %68 = vector.broadcast %25 : f32 to vector<1x32xf32>
    %69 = arith.addf %67, %68 : vector<1x32xf32>
    %70 = tpu.concatenate %49, %59, %69 in 0 : vector<1x32xf32>, vector<1x32xf32>, vector<1x32xf32> -> vector<3x32xf32>
    %c0_13 = arith.constant 0 : index
    %c0_14 = arith.constant 0 : index
    %71 = vector.load %arg9[%c0_13, %c0_14] : memref<16x3xf32, #tpu.memory_space<vmem>>, vector<16x3xf32>
    %cst = arith.constant dense<0.000000e+00> : vector<16x32xf32>
    %72 = tpu.matmul %71, %70, %cst {dimension_numbers = #tpu.dot_dimension_numbers<[1], [0], [0], [1], [0, 0, 1, 1], [], []>} : vector<16x3xf32>, vector<3x32xf32>, vector<16x32xf32> -> vector<16x32xf32>
    %c0_15 = arith.constant 0 : index
    %c0_16 = arith.constant 0 : index
    %73 = vector.load %arg10[%c0_15, %c0_16] : memref<16x3xf32, #tpu.memory_space<vmem>>, vector<16x3xf32>
    %c0_17 = arith.constant 0 : index
    %c0_18 = arith.constant 0 : index
    %c0_19 = arith.constant 0 : index
    %74 = vector.load %arg4[%c0_17, %c0_18, %c0_19] : memref<1x3x32xf32, #tpu.memory_space<vmem>>, vector<1x3x32xf32>
    %75 = vector.shape_cast %74 : vector<1x3x32xf32> to vector<3x32xf32>
    %cst_20 = arith.constant dense<0.000000e+00> : vector<16x32xf32>
    %76 = tpu.matmul %73, %75, %cst_20 {dimension_numbers = #tpu.dot_dimension_numbers<[1], [0], [0], [1], [0, 0, 1, 1], [], []>} : vector<16x3xf32>, vector<3x32xf32>, vector<16x32xf32> -> vector<16x32xf32>
    %77 = arith.addf %72, %76 : vector<16x32xf32>
    %c0_21 = arith.constant 0 : index
    %c0_22 = arith.constant 0 : index
    %78 = vector.load %arg11[%c0_21, %c0_22] : memref<16x1xf32, #tpu.memory_space<vmem>>, vector<16x1xf32>
    %79 = vector.broadcast %78 : vector<16x1xf32> to vector<16x32xf32>
    %80 = arith.addf %77, %79 : vector<16x32xf32>
    %cst_23 = arith.constant 0.000000e+00 : f32
    %81 = vector.broadcast %cst_23 : f32 to vector<16x32xf32>
    %82 = arith.maximumf %80, %81 : vector<16x32xf32>
    %c0_24 = arith.constant 0 : index
    %c0_25 = arith.constant 0 : index
    %c0_26 = arith.constant 0 : index
    %83 = vector.load %arg5[%c0_24, %c0_25, %c0_26] : memref<1x3x16xf32, #tpu.memory_space<vmem>>, vector<1x1x16xf32>
    %84 = vector.shape_cast %83 : vector<1x1x16xf32> to vector<1x16xf32>
    %c0_27 = arith.constant 0 : index
    %c1_28 = arith.constant 1 : index
    %c0_29 = arith.constant 0 : index
    %85 = vector.load %arg5[%c0_27, %c1_28, %c0_29] : memref<1x3x16xf32, #tpu.memory_space<vmem>>, vector<1x1x16xf32>
    %86 = vector.shape_cast %85 : vector<1x1x16xf32> to vector<1x16xf32>
    %c0_30 = arith.constant 0 : index
    %c2_31 = arith.constant 2 : index
    %c0_32 = arith.constant 0 : index
    %87 = vector.load %arg5[%c0_30, %c2_31, %c0_32] : memref<1x3x16xf32, #tpu.memory_space<vmem>>, vector<1x1x16xf32>
    %88 = vector.shape_cast %87 : vector<1x1x16xf32> to vector<1x16xf32>
    %89 = vector.broadcast %3 : f32 to vector<1x16xf32>
    %90 = arith.mulf %89, %84 : vector<1x16xf32>
    %91 = vector.broadcast %5 : f32 to vector<1x16xf32>
    %92 = arith.mulf %91, %86 : vector<1x16xf32>
    %93 = arith.addf %90, %92 : vector<1x16xf32>
    %94 = vector.broadcast %7 : f32 to vector<1x16xf32>
    %95 = arith.mulf %94, %88 : vector<1x16xf32>
    %96 = arith.addf %93, %95 : vector<1x16xf32>
    %97 = vector.broadcast %9 : f32 to vector<1x16xf32>
    %98 = arith.addf %96, %97 : vector<1x16xf32>
    %99 = vector.broadcast %11 : f32 to vector<1x16xf32>
    %100 = arith.mulf %99, %84 : vector<1x16xf32>
    %101 = vector.broadcast %13 : f32 to vector<1x16xf32>
    %102 = arith.mulf %101, %86 : vector<1x16xf32>
    %103 = arith.addf %100, %102 : vector<1x16xf32>
    %104 = vector.broadcast %15 : f32 to vector<1x16xf32>
    %105 = arith.mulf %104, %88 : vector<1x16xf32>
    %106 = arith.addf %103, %105 : vector<1x16xf32>
    %107 = vector.broadcast %17 : f32 to vector<1x16xf32>
    %108 = arith.addf %106, %107 : vector<1x16xf32>
    %109 = vector.broadcast %19 : f32 to vector<1x16xf32>
    %110 = arith.mulf %109, %84 : vector<1x16xf32>
    %111 = vector.broadcast %21 : f32 to vector<1x16xf32>
    %112 = arith.mulf %111, %86 : vector<1x16xf32>
    %113 = arith.addf %110, %112 : vector<1x16xf32>
    %114 = vector.broadcast %23 : f32 to vector<1x16xf32>
    %115 = arith.mulf %114, %88 : vector<1x16xf32>
    %116 = arith.addf %113, %115 : vector<1x16xf32>
    %117 = vector.broadcast %25 : f32 to vector<1x16xf32>
    %118 = arith.addf %116, %117 : vector<1x16xf32>
    %119 = tpu.concatenate %98, %108, %118 in 0 : vector<1x16xf32>, vector<1x16xf32>, vector<1x16xf32> -> vector<3x16xf32>
    %c0_33 = arith.constant 0 : index
    %c0_34 = arith.constant 0 : index
    %120 = vector.load %arg9[%c0_33, %c0_34] : memref<16x3xf32, #tpu.memory_space<vmem>>, vector<16x3xf32>
    %cst_35 = arith.constant dense<0.000000e+00> : vector<16x16xf32>
    %121 = tpu.matmul %120, %119, %cst_35 {dimension_numbers = #tpu.dot_dimension_numbers<[1], [0], [0], [1], [0, 0, 1, 1], [], []>} : vector<16x3xf32>, vector<3x16xf32>, vector<16x16xf32> -> vector<16x16xf32>
    %c0_36 = arith.constant 0 : index
    %c0_37 = arith.constant 0 : index
    %122 = vector.load %arg10[%c0_36, %c0_37] : memref<16x3xf32, #tpu.memory_space<vmem>>, vector<16x3xf32>
    %c0_38 = arith.constant 0 : index
    %c0_39 = arith.constant 0 : index
    %c0_40 = arith.constant 0 : index
    %123 = vector.load %arg6[%c0_38, %c0_39, %c0_40] : memref<1x3x16xf32, #tpu.memory_space<vmem>>, vector<1x3x16xf32>
    %124 = vector.shape_cast %123 : vector<1x3x16xf32> to vector<3x16xf32>
    %cst_41 = arith.constant dense<0.000000e+00> : vector<16x16xf32>
    %125 = tpu.matmul %122, %124, %cst_41 {dimension_numbers = #tpu.dot_dimension_numbers<[1], [0], [0], [1], [0, 0, 1, 1], [], []>} : vector<16x3xf32>, vector<3x16xf32>, vector<16x16xf32> -> vector<16x16xf32>
    %126 = arith.addf %121, %125 : vector<16x16xf32>
    %c0_42 = arith.constant 0 : index
    %c0_43 = arith.constant 0 : index
    %127 = vector.load %arg11[%c0_42, %c0_43] : memref<16x1xf32, #tpu.memory_space<vmem>>, vector<16x1xf32>
    %128 = vector.broadcast %127 : vector<16x1xf32> to vector<16x16xf32>
    %129 = arith.addf %126, %128 : vector<16x16xf32>
    %cst_44 = arith.constant 0.000000e+00 : f32
    %130 = vector.broadcast %cst_44 : f32 to vector<16x16xf32>
    %131 = arith.maximumf %129, %130 : vector<16x16xf32>
    %c0_45 = arith.constant 0 : index
    %c0_46 = arith.constant 0 : index
    %132 = vector.load %arg12[%c0_45, %c0_46] : memref<32x16xf32, #tpu.memory_space<vmem>>, vector<32x16xf32>
    %cst_47 = arith.constant dense<0.000000e+00> : vector<32x16xf32>
    %133 = tpu.matmul %132, %131, %cst_47 {dimension_numbers = #tpu.dot_dimension_numbers<[1], [0], [0], [1], [0, 0, 1, 1], [], []>} : vector<32x16xf32>, vector<16x16xf32>, vector<32x16xf32> -> vector<32x16xf32>
    %c0_48 = arith.constant 0 : index
    %c0_49 = arith.constant 0 : index
    %134 = vector.load %arg13[%c0_48, %c0_49] : memref<32x1xf32, #tpu.memory_space<vmem>>, vector<32x1xf32>
    %135 = vector.broadcast %134 : vector<32x1xf32> to vector<32x16xf32>
    %136 = arith.addf %133, %135 : vector<32x16xf32>
    %cst_50 = arith.constant 0.000000e+00 : f32
    %137 = vector.broadcast %cst_50 : f32 to vector<32x16xf32>
    %138 = arith.maximumf %136, %137 : vector<32x16xf32>
    %c0_51 = arith.constant 0 : index
    %c0_52 = arith.constant 0 : index
    %c0_53 = arith.constant 0 : index
    %139 = vector.load %arg7[%c0_51, %c0_52, %c0_53] : memref<1x3x8xf32, #tpu.memory_space<vmem>>, vector<1x1x8xf32>
    %140 = vector.shape_cast %139 : vector<1x1x8xf32> to vector<1x8xf32>
    %c0_54 = arith.constant 0 : index
    %c1_55 = arith.constant 1 : index
    %c0_56 = arith.constant 0 : index
    %141 = vector.load %arg7[%c0_54, %c1_55, %c0_56] : memref<1x3x8xf32, #tpu.memory_space<vmem>>, vector<1x1x8xf32>
    %142 = vector.shape_cast %141 : vector<1x1x8xf32> to vector<1x8xf32>
    %c0_57 = arith.constant 0 : index
    %c2_58 = arith.constant 2 : index
    %c0_59 = arith.constant 0 : index
    %143 = vector.load %arg7[%c0_57, %c2_58, %c0_59] : memref<1x3x8xf32, #tpu.memory_space<vmem>>, vector<1x1x8xf32>
    %144 = vector.shape_cast %143 : vector<1x1x8xf32> to vector<1x8xf32>
    %145 = vector.broadcast %3 : f32 to vector<1x8xf32>
    %146 = arith.mulf %145, %140 : vector<1x8xf32>
    %147 = vector.broadcast %5 : f32 to vector<1x8xf32>
    %148 = arith.mulf %147, %142 : vector<1x8xf32>
    %149 = arith.addf %146, %148 : vector<1x8xf32>
    %150 = vector.broadcast %7 : f32 to vector<1x8xf32>
    %151 = arith.mulf %150, %144 : vector<1x8xf32>
    %152 = arith.addf %149, %151 : vector<1x8xf32>
    %153 = vector.broadcast %9 : f32 to vector<1x8xf32>
    %154 = arith.addf %152, %153 : vector<1x8xf32>
    %155 = vector.broadcast %11 : f32 to vector<1x8xf32>
    %156 = arith.mulf %155, %140 : vector<1x8xf32>
    %157 = vector.broadcast %13 : f32 to vector<1x8xf32>
    %158 = arith.mulf %157, %142 : vector<1x8xf32>
    %159 = arith.addf %156, %158 : vector<1x8xf32>
    %160 = vector.broadcast %15 : f32 to vector<1x8xf32>
    %161 = arith.mulf %160, %144 : vector<1x8xf32>
    %162 = arith.addf %159, %161 : vector<1x8xf32>
    %163 = vector.broadcast %17 : f32 to vector<1x8xf32>
    %164 = arith.addf %162, %163 : vector<1x8xf32>
    %165 = vector.broadcast %19 : f32 to vector<1x8xf32>
    %166 = arith.mulf %165, %140 : vector<1x8xf32>
    %167 = vector.broadcast %21 : f32 to vector<1x8xf32>
    %168 = arith.mulf %167, %142 : vector<1x8xf32>
    %169 = arith.addf %166, %168 : vector<1x8xf32>
    %170 = vector.broadcast %23 : f32 to vector<1x8xf32>
    %171 = arith.mulf %170, %144 : vector<1x8xf32>
    %172 = arith.addf %169, %171 : vector<1x8xf32>
    %173 = vector.broadcast %25 : f32 to vector<1x8xf32>
    %174 = arith.addf %172, %173 : vector<1x8xf32>
    %175 = tpu.concatenate %154, %164, %174 in 0 : vector<1x8xf32>, vector<1x8xf32>, vector<1x8xf32> -> vector<3x8xf32>
    %c0_60 = arith.constant 0 : index
    %c0_61 = arith.constant 0 : index
    %176 = vector.load %arg9[%c0_60, %c0_61] : memref<16x3xf32, #tpu.memory_space<vmem>>, vector<16x3xf32>
    %cst_62 = arith.constant dense<0.000000e+00> : vector<16x8xf32>
    %177 = tpu.matmul %176, %175, %cst_62 {dimension_numbers = #tpu.dot_dimension_numbers<[1], [0], [0], [1], [0, 0, 1, 1], [], []>} : vector<16x3xf32>, vector<3x8xf32>, vector<16x8xf32> -> vector<16x8xf32>
    %c0_63 = arith.constant 0 : index
    %c0_64 = arith.constant 0 : index
    %178 = vector.load %arg10[%c0_63, %c0_64] : memref<16x3xf32, #tpu.memory_space<vmem>>, vector<16x3xf32>
    %c0_65 = arith.constant 0 : index
    %c0_66 = arith.constant 0 : index
    %c0_67 = arith.constant 0 : index
    %179 = vector.load %arg8[%c0_65, %c0_66, %c0_67] : memref<1x3x8xf32, #tpu.memory_space<vmem>>, vector<1x3x8xf32>
    %180 = vector.shape_cast %179 : vector<1x3x8xf32> to vector<3x8xf32>
    %cst_68 = arith.constant dense<0.000000e+00> : vector<16x8xf32>
    %181 = tpu.matmul %178, %180, %cst_68 {dimension_numbers = #tpu.dot_dimension_numbers<[1], [0], [0], [1], [0, 0, 1, 1], [], []>} : vector<16x3xf32>, vector<3x8xf32>, vector<16x8xf32> -> vector<16x8xf32>
    %182 = arith.addf %177, %181 : vector<16x8xf32>
    %c0_69 = arith.constant 0 : index
    %c0_70 = arith.constant 0 : index
    %183 = vector.load %arg11[%c0_69, %c0_70] : memref<16x1xf32, #tpu.memory_space<vmem>>, vector<16x1xf32>
    %184 = vector.broadcast %183 : vector<16x1xf32> to vector<16x8xf32>
    %185 = arith.addf %182, %184 : vector<16x8xf32>
    %cst_71 = arith.constant 0.000000e+00 : f32
    %186 = vector.broadcast %cst_71 : f32 to vector<16x8xf32>
    %187 = arith.maximumf %185, %186 : vector<16x8xf32>
    %c0_72 = arith.constant 0 : index
    %c0_73 = arith.constant 0 : index
    %188 = vector.load %arg12[%c0_72, %c0_73] : memref<32x16xf32, #tpu.memory_space<vmem>>, vector<32x16xf32>
    %cst_74 = arith.constant dense<0.000000e+00> : vector<32x8xf32>
    %189 = tpu.matmul %188, %187, %cst_74 {dimension_numbers = #tpu.dot_dimension_numbers<[1], [0], [0], [1], [0, 0, 1, 1], [], []>} : vector<32x16xf32>, vector<16x8xf32>, vector<32x8xf32> -> vector<32x8xf32>
    %c0_75 = arith.constant 0 : index
    %c0_76 = arith.constant 0 : index
    %190 = vector.load %arg13[%c0_75, %c0_76] : memref<32x1xf32, #tpu.memory_space<vmem>>, vector<32x1xf32>
    %191 = vector.broadcast %190 : vector<32x1xf32> to vector<32x8xf32>
    %192 = arith.addf %189, %191 : vector<32x8xf32>
    %cst_77 = arith.constant 0.000000e+00 : f32
    %193 = vector.broadcast %cst_77 : f32 to vector<32x8xf32>
    %194 = arith.maximumf %192, %193 : vector<32x8xf32>
    %c0_78 = arith.constant 0 : index
    %c0_79 = arith.constant 0 : index
    %195 = vector.load %arg14[%c0_78, %c0_79] : memref<64x32xf32, #tpu.memory_space<vmem>>, vector<64x32xf32>
    %cst_80 = arith.constant dense<0.000000e+00> : vector<64x8xf32>
    %196 = tpu.matmul %195, %194, %cst_80 {dimension_numbers = #tpu.dot_dimension_numbers<[1], [0], [0], [1], [0, 0, 1, 1], [], []>} : vector<64x32xf32>, vector<32x8xf32>, vector<64x8xf32> -> vector<64x8xf32>
    %c0_81 = arith.constant 0 : index
    %c0_82 = arith.constant 0 : index
    %197 = vector.load %arg15[%c0_81, %c0_82] : memref<64x1xf32, #tpu.memory_space<vmem>>, vector<64x1xf32>
    %198 = vector.broadcast %197 : vector<64x1xf32> to vector<64x8xf32>
    %199 = arith.addf %196, %198 : vector<64x8xf32>
    %cst_83 = arith.constant 0.000000e+00 : f32
    %200 = vector.broadcast %cst_83 : f32 to vector<64x8xf32>
    %201 = arith.maximumf %199, %200 : vector<64x8xf32>
    %202 = vector.broadcast %3 : f32 to vector<1x32xf32>
    %203 = arith.mulf %202, %49 : vector<1x32xf32>
    %204 = vector.broadcast %5 : f32 to vector<1x32xf32>
    %205 = arith.mulf %204, %59 : vector<1x32xf32>
    %206 = arith.addf %203, %205 : vector<1x32xf32>
    %207 = vector.broadcast %7 : f32 to vector<1x32xf32>
    %208 = arith.mulf %207, %69 : vector<1x32xf32>
    %209 = arith.addf %206, %208 : vector<1x32xf32>
    %210 = vector.broadcast %9 : f32 to vector<1x32xf32>
    %211 = arith.addf %209, %210 : vector<1x32xf32>
    %212 = vector.broadcast %11 : f32 to vector<1x32xf32>
    %213 = arith.mulf %212, %49 : vector<1x32xf32>
    %214 = vector.broadcast %13 : f32 to vector<1x32xf32>
    %215 = arith.mulf %214, %59 : vector<1x32xf32>
    %216 = arith.addf %213, %215 : vector<1x32xf32>
    %217 = vector.broadcast %15 : f32 to vector<1x32xf32>
    %218 = arith.mulf %217, %69 : vector<1x32xf32>
    %219 = arith.addf %216, %218 : vector<1x32xf32>
    %220 = vector.broadcast %17 : f32 to vector<1x32xf32>
    %221 = arith.addf %219, %220 : vector<1x32xf32>
    %222 = vector.broadcast %19 : f32 to vector<1x32xf32>
    %223 = arith.mulf %222, %49 : vector<1x32xf32>
    %224 = vector.broadcast %21 : f32 to vector<1x32xf32>
    %225 = arith.mulf %224, %59 : vector<1x32xf32>
    %226 = arith.addf %223, %225 : vector<1x32xf32>
    %227 = vector.broadcast %23 : f32 to vector<1x32xf32>
    %228 = arith.mulf %227, %69 : vector<1x32xf32>
    %229 = arith.addf %226, %228 : vector<1x32xf32>
    %230 = vector.broadcast %25 : f32 to vector<1x32xf32>
    %231 = arith.addf %229, %230 : vector<1x32xf32>
    %232 = math.absf %231 : vector<1x32xf32>
    %cst_84 = arith.constant 9.99999997E-7 : f32
    %233 = vector.broadcast %cst_84 : f32 to vector<1x32xf32>
    %234 = arith.cmpf ogt, %232, %233 : vector<1x32xf32>
    %cst_85 = arith.constant 9.99999997E-7 : f32
    %235 = vector.broadcast %cst_85 : f32 to vector<1x32xf32>
    %236 = arith.select %234, %231, %235 : vector<1x32xi1>, vector<1x32xf32>
    %237 = tpu.reciprocal %236 {approx = true} : vector<1x32xf32> -> vector<1x32xf32>
    %cst_86 = arith.constant 1.000000e+00 : f32
    %238 = arith.mulf %27, %cst_86 : f32
    %239 = vector.broadcast %238 : f32 to vector<1x32xf32>
    %240 = arith.mulf %239, %211 : vector<1x32xf32>
    %241 = arith.mulf %240, %237 : vector<1x32xf32>
    %cst_87 = arith.constant 1.000000e+00 : f32
    %242 = arith.mulf %31, %cst_87 : f32
    %243 = vector.broadcast %242 : f32 to vector<1x32xf32>
    %244 = arith.addf %241, %243 : vector<1x32xf32>
    %cst_88 = arith.constant 1.000000e+00 : f32
    %245 = arith.mulf %29, %cst_88 : f32
    %246 = vector.broadcast %245 : f32 to vector<1x32xf32>
    %247 = arith.mulf %246, %221 : vector<1x32xf32>
    %248 = arith.mulf %247, %237 : vector<1x32xf32>
    %cst_89 = arith.constant 1.000000e+00 : f32
    %249 = arith.mulf %33, %cst_89 : f32
    %250 = vector.broadcast %249 : f32 to vector<1x32xf32>
    %251 = arith.addf %248, %250 : vector<1x32xf32>
    %cst_90 = arith.constant -1.000000e+00 : f32
    %cst_91 = arith.constant 1.600000e+01 : f32
    %252 = vector.broadcast %cst_90 : f32 to vector<1x32xf32>
    %253 = arith.maximumf %252, %244 : vector<1x32xf32>
    %254 = vector.broadcast %cst_91 : f32 to vector<1x32xf32>
    %255 = arith.minimumf %254, %253 : vector<1x32xf32>
    %cst_92 = arith.constant -1.000000e+00 : f32
    %cst_93 = arith.constant 1.600000e+01 : f32
    %256 = vector.broadcast %cst_92 : f32 to vector<1x32xf32>
    %257 = arith.maximumf %256, %251 : vector<1x32xf32>
    %258 = vector.broadcast %cst_93 : f32 to vector<1x32xf32>
    %259 = arith.minimumf %258, %257 : vector<1x32xf32>
    %260 = math.floor %255 : vector<1x32xf32>
    %261 = arith.fptosi %260 : vector<1x32xf32> to vector<1x32xi32>
    %262 = math.floor %259 : vector<1x32xf32>
    %263 = arith.fptosi %262 : vector<1x32xf32> to vector<1x32xi32>
    %cst_94 = arith.constant 9.99999997E-7 : f32
    %264 = vector.broadcast %cst_94 : f32 to vector<1x32xf32>
    %265 = arith.cmpf ogt, %231, %264 : vector<1x32xf32>
    %c0_i32_95 = arith.constant 0 : i32
    %266 = vector.broadcast %c0_i32_95 : i32 to vector<1x32xi32>
    %267 = arith.cmpi sge, %261, %266 : vector<1x32xi32>
    %268 = arith.andi %265, %267 : vector<1x32xi1>
    %c16_i32 = arith.constant 16 : i32
    %269 = vector.broadcast %c16_i32 : i32 to vector<1x32xi32>
    %270 = arith.cmpi slt, %261, %269 : vector<1x32xi32>
    %271 = arith.andi %268, %270 : vector<1x32xi1>
    %c0_i32_96 = arith.constant 0 : i32
    %272 = vector.broadcast %c0_i32_96 : i32 to vector<1x32xi32>
    %273 = arith.cmpi sge, %263, %272 : vector<1x32xi32>
    %274 = arith.andi %271, %273 : vector<1x32xi1>
    %c16_i32_97 = arith.constant 16 : i32
    %275 = vector.broadcast %c16_i32_97 : i32 to vector<1x32xi32>
    %276 = arith.cmpi slt, %263, %275 : vector<1x32xi32>
    %277 = arith.andi %274, %276 : vector<1x32xi1>
    %c16_i32_98 = arith.constant 16 : i32
    %278 = vector.broadcast %c16_i32_98 : i32 to vector<1x32xi32>
    %279 = arith.muli %263, %278 : vector<1x32xi32>
    %280 = arith.addi %279, %261 : vector<1x32xi32>
    %c-1_i32 = arith.constant -1 : i32
    %281 = vector.broadcast %c-1_i32 : i32 to vector<1x32xi32>
    %282 = arith.select %277, %280, %281 : vector<1x32xi1>, vector<1x32xi32>
    %283 = arith.truncf %82 : vector<16x32xf32> to vector<16x32xbf16>
    %cst_99 = arith.constant 0.000000e+00 : f32
    %284 = vector.broadcast %cst_99 : f32 to vector<16x256xf32>
    %285 = tpu.iota {dimensions = array<i32: 0>} : vector<256x32xi32>
    %286 = vector.broadcast %282 : vector<1x32xi32> to vector<256x32xi32>
    %287 = arith.cmpi eq, %285, %286 : vector<256x32xi32>
    %288 = arith.extui %287 : vector<256x32xi1> to vector<256x32xi32>
    %289 = arith.sitofp %288 : vector<256x32xi32> to vector<256x32xf32>
    %290 = arith.truncf %289 : vector<256x32xf32> to vector<256x32xbf16>
    %cst_100 = arith.constant dense<0.000000e+00> : vector<16x256xf32>
    %291 = tpu.matmul %283, %290, %cst_100 {dimension_numbers = #tpu.dot_dimension_numbers<[1], [1], [0], [0], [0, 0, 1, 0], [], []>} : vector<16x32xbf16>, vector<256x32xbf16>, vector<16x256xf32> -> vector<16x256xf32>
    %292 = arith.addf %284, %291 : vector<16x256xf32>
    %293 = vector.broadcast %3 : f32 to vector<1x16xf32>
    %294 = arith.mulf %293, %98 : vector<1x16xf32>
    %295 = vector.broadcast %5 : f32 to vector<1x16xf32>
    %296 = arith.mulf %295, %108 : vector<1x16xf32>
    %297 = arith.addf %294, %296 : vector<1x16xf32>
    %298 = vector.broadcast %7 : f32 to vector<1x16xf32>
    %299 = arith.mulf %298, %118 : vector<1x16xf32>
    %300 = arith.addf %297, %299 : vector<1x16xf32>
    %301 = vector.broadcast %9 : f32 to vector<1x16xf32>
    %302 = arith.addf %300, %301 : vector<1x16xf32>
    %303 = vector.broadcast %11 : f32 to vector<1x16xf32>
    %304 = arith.mulf %303, %98 : vector<1x16xf32>
    %305 = vector.broadcast %13 : f32 to vector<1x16xf32>
    %306 = arith.mulf %305, %108 : vector<1x16xf32>
    %307 = arith.addf %304, %306 : vector<1x16xf32>
    %308 = vector.broadcast %15 : f32 to vector<1x16xf32>
    %309 = arith.mulf %308, %118 : vector<1x16xf32>
    %310 = arith.addf %307, %309 : vector<1x16xf32>
    %311 = vector.broadcast %17 : f32 to vector<1x16xf32>
    %312 = arith.addf %310, %311 : vector<1x16xf32>
    %313 = vector.broadcast %19 : f32 to vector<1x16xf32>
    %314 = arith.mulf %313, %98 : vector<1x16xf32>
    %315 = vector.broadcast %21 : f32 to vector<1x16xf32>
    %316 = arith.mulf %315, %108 : vector<1x16xf32>
    %317 = arith.addf %314, %316 : vector<1x16xf32>
    %318 = vector.broadcast %23 : f32 to vector<1x16xf32>
    %319 = arith.mulf %318, %118 : vector<1x16xf32>
    %320 = arith.addf %317, %319 : vector<1x16xf32>
    %321 = vector.broadcast %25 : f32 to vector<1x16xf32>
    %322 = arith.addf %320, %321 : vector<1x16xf32>
    %323 = math.absf %322 : vector<1x16xf32>
    %cst_101 = arith.constant 9.99999997E-7 : f32
    %324 = vector.broadcast %cst_101 : f32 to vector<1x16xf32>
    %325 = arith.cmpf ogt, %323, %324 : vector<1x16xf32>
    %cst_102 = arith.constant 9.99999997E-7 : f32
    %326 = vector.broadcast %cst_102 : f32 to vector<1x16xf32>
    %327 = arith.select %325, %322, %326 : vector<1x16xi1>, vector<1x16xf32>
    %328 = tpu.reciprocal %327 {approx = true} : vector<1x16xf32> -> vector<1x16xf32>
    %cst_103 = arith.constant 5.000000e-01 : f32
    %329 = arith.mulf %27, %cst_103 : f32
    %330 = vector.broadcast %329 : f32 to vector<1x16xf32>
    %331 = arith.mulf %330, %302 : vector<1x16xf32>
    %332 = arith.mulf %331, %328 : vector<1x16xf32>
    %cst_104 = arith.constant 5.000000e-01 : f32
    %333 = arith.mulf %31, %cst_104 : f32
    %334 = vector.broadcast %333 : f32 to vector<1x16xf32>
    %335 = arith.addf %332, %334 : vector<1x16xf32>
    %cst_105 = arith.constant 5.000000e-01 : f32
    %336 = arith.mulf %29, %cst_105 : f32
    %337 = vector.broadcast %336 : f32 to vector<1x16xf32>
    %338 = arith.mulf %337, %312 : vector<1x16xf32>
    %339 = arith.mulf %338, %328 : vector<1x16xf32>
    %cst_106 = arith.constant 5.000000e-01 : f32
    %340 = arith.mulf %33, %cst_106 : f32
    %341 = vector.broadcast %340 : f32 to vector<1x16xf32>
    %342 = arith.addf %339, %341 : vector<1x16xf32>
    %cst_107 = arith.constant -1.000000e+00 : f32
    %cst_108 = arith.constant 8.000000e+00 : f32
    %343 = vector.broadcast %cst_107 : f32 to vector<1x16xf32>
    %344 = arith.maximumf %343, %335 : vector<1x16xf32>
    %345 = vector.broadcast %cst_108 : f32 to vector<1x16xf32>
    %346 = arith.minimumf %345, %344 : vector<1x16xf32>
    %cst_109 = arith.constant -1.000000e+00 : f32
    %cst_110 = arith.constant 8.000000e+00 : f32
    %347 = vector.broadcast %cst_109 : f32 to vector<1x16xf32>
    %348 = arith.maximumf %347, %342 : vector<1x16xf32>
    %349 = vector.broadcast %cst_110 : f32 to vector<1x16xf32>
    %350 = arith.minimumf %349, %348 : vector<1x16xf32>
    %351 = math.floor %346 : vector<1x16xf32>
    %352 = arith.fptosi %351 : vector<1x16xf32> to vector<1x16xi32>
    %353 = math.floor %350 : vector<1x16xf32>
    %354 = arith.fptosi %353 : vector<1x16xf32> to vector<1x16xi32>
    %cst_111 = arith.constant 9.99999997E-7 : f32
    %355 = vector.broadcast %cst_111 : f32 to vector<1x16xf32>
    %356 = arith.cmpf ogt, %322, %355 : vector<1x16xf32>
    %c0_i32_112 = arith.constant 0 : i32
    %357 = vector.broadcast %c0_i32_112 : i32 to vector<1x16xi32>
    %358 = arith.cmpi sge, %352, %357 : vector<1x16xi32>
    %359 = arith.andi %356, %358 : vector<1x16xi1>
    %c8_i32 = arith.constant 8 : i32
    %360 = vector.broadcast %c8_i32 : i32 to vector<1x16xi32>
    %361 = arith.cmpi slt, %352, %360 : vector<1x16xi32>
    %362 = arith.andi %359, %361 : vector<1x16xi1>
    %c0_i32_113 = arith.constant 0 : i32
    %363 = vector.broadcast %c0_i32_113 : i32 to vector<1x16xi32>
    %364 = arith.cmpi sge, %354, %363 : vector<1x16xi32>
    %365 = arith.andi %362, %364 : vector<1x16xi1>
    %c8_i32_114 = arith.constant 8 : i32
    %366 = vector.broadcast %c8_i32_114 : i32 to vector<1x16xi32>
    %367 = arith.cmpi slt, %354, %366 : vector<1x16xi32>
    %368 = arith.andi %365, %367 : vector<1x16xi1>
    %c8_i32_115 = arith.constant 8 : i32
    %369 = vector.broadcast %c8_i32_115 : i32 to vector<1x16xi32>
    %370 = arith.muli %354, %369 : vector<1x16xi32>
    %371 = arith.addi %370, %352 : vector<1x16xi32>
    %c-1_i32_116 = arith.constant -1 : i32
    %372 = vector.broadcast %c-1_i32_116 : i32 to vector<1x16xi32>
    %373 = arith.select %368, %371, %372 : vector<1x16xi1>, vector<1x16xi32>
    %374 = arith.truncf %138 : vector<32x16xf32> to vector<32x16xbf16>
    %cst_117 = arith.constant 0.000000e+00 : f32
    %375 = vector.broadcast %cst_117 : f32 to vector<32x64xf32>
    %376 = tpu.iota {dimensions = array<i32: 0>} : vector<64x16xi32>
    %377 = vector.broadcast %373 : vector<1x16xi32> to vector<64x16xi32>
    %378 = arith.cmpi eq, %376, %377 : vector<64x16xi32>
    %379 = arith.extui %378 : vector<64x16xi1> to vector<64x16xi32>
    %380 = arith.sitofp %379 : vector<64x16xi32> to vector<64x16xf32>
    %381 = arith.truncf %380 : vector<64x16xf32> to vector<64x16xbf16>
    %cst_118 = arith.constant dense<0.000000e+00> : vector<32x64xf32>
    %382 = tpu.matmul %374, %381, %cst_118 {dimension_numbers = #tpu.dot_dimension_numbers<[1], [1], [0], [0], [0, 0, 1, 0], [], []>} : vector<32x16xbf16>, vector<64x16xbf16>, vector<32x64xf32> -> vector<32x64xf32>
    %383 = arith.addf %375, %382 : vector<32x64xf32>
    %384 = vector.broadcast %3 : f32 to vector<1x8xf32>
    %385 = arith.mulf %384, %154 : vector<1x8xf32>
    %386 = vector.broadcast %5 : f32 to vector<1x8xf32>
    %387 = arith.mulf %386, %164 : vector<1x8xf32>
    %388 = arith.addf %385, %387 : vector<1x8xf32>
    %389 = vector.broadcast %7 : f32 to vector<1x8xf32>
    %390 = arith.mulf %389, %174 : vector<1x8xf32>
    %391 = arith.addf %388, %390 : vector<1x8xf32>
    %392 = vector.broadcast %9 : f32 to vector<1x8xf32>
    %393 = arith.addf %391, %392 : vector<1x8xf32>
    %394 = vector.broadcast %11 : f32 to vector<1x8xf32>
    %395 = arith.mulf %394, %154 : vector<1x8xf32>
    %396 = vector.broadcast %13 : f32 to vector<1x8xf32>
    %397 = arith.mulf %396, %164 : vector<1x8xf32>
    %398 = arith.addf %395, %397 : vector<1x8xf32>
    %399 = vector.broadcast %15 : f32 to vector<1x8xf32>
    %400 = arith.mulf %399, %174 : vector<1x8xf32>
    %401 = arith.addf %398, %400 : vector<1x8xf32>
    %402 = vector.broadcast %17 : f32 to vector<1x8xf32>
    %403 = arith.addf %401, %402 : vector<1x8xf32>
    %404 = vector.broadcast %19 : f32 to vector<1x8xf32>
    %405 = arith.mulf %404, %154 : vector<1x8xf32>
    %406 = vector.broadcast %21 : f32 to vector<1x8xf32>
    %407 = arith.mulf %406, %164 : vector<1x8xf32>
    %408 = arith.addf %405, %407 : vector<1x8xf32>
    %409 = vector.broadcast %23 : f32 to vector<1x8xf32>
    %410 = arith.mulf %409, %174 : vector<1x8xf32>
    %411 = arith.addf %408, %410 : vector<1x8xf32>
    %412 = vector.broadcast %25 : f32 to vector<1x8xf32>
    %413 = arith.addf %411, %412 : vector<1x8xf32>
    %414 = math.absf %413 : vector<1x8xf32>
    %cst_119 = arith.constant 9.99999997E-7 : f32
    %415 = vector.broadcast %cst_119 : f32 to vector<1x8xf32>
    %416 = arith.cmpf ogt, %414, %415 : vector<1x8xf32>
    %cst_120 = arith.constant 9.99999997E-7 : f32
    %417 = vector.broadcast %cst_120 : f32 to vector<1x8xf32>
    %418 = arith.select %416, %413, %417 : vector<1x8xi1>, vector<1x8xf32>
    %419 = tpu.reciprocal %418 {approx = true} : vector<1x8xf32> -> vector<1x8xf32>
    %cst_121 = arith.constant 2.500000e-01 : f32
    %420 = arith.mulf %27, %cst_121 : f32
    %421 = vector.broadcast %420 : f32 to vector<1x8xf32>
    %422 = arith.mulf %421, %393 : vector<1x8xf32>
    %423 = arith.mulf %422, %419 : vector<1x8xf32>
    %cst_122 = arith.constant 2.500000e-01 : f32
    %424 = arith.mulf %31, %cst_122 : f32
    %425 = vector.broadcast %424 : f32 to vector<1x8xf32>
    %426 = arith.addf %423, %425 : vector<1x8xf32>
    %cst_123 = arith.constant 2.500000e-01 : f32
    %427 = arith.mulf %29, %cst_123 : f32
    %428 = vector.broadcast %427 : f32 to vector<1x8xf32>
    %429 = arith.mulf %428, %403 : vector<1x8xf32>
    %430 = arith.mulf %429, %419 : vector<1x8xf32>
    %cst_124 = arith.constant 2.500000e-01 : f32
    %431 = arith.mulf %33, %cst_124 : f32
    %432 = vector.broadcast %431 : f32 to vector<1x8xf32>
    %433 = arith.addf %430, %432 : vector<1x8xf32>
    %cst_125 = arith.constant -1.000000e+00 : f32
    %cst_126 = arith.constant 4.000000e+00 : f32
    %434 = vector.broadcast %cst_125 : f32 to vector<1x8xf32>
    %435 = arith.maximumf %434, %426 : vector<1x8xf32>
    %436 = vector.broadcast %cst_126 : f32 to vector<1x8xf32>
    %437 = arith.minimumf %436, %435 : vector<1x8xf32>
    %cst_127 = arith.constant -1.000000e+00 : f32
    %cst_128 = arith.constant 4.000000e+00 : f32
    %438 = vector.broadcast %cst_127 : f32 to vector<1x8xf32>
    %439 = arith.maximumf %438, %433 : vector<1x8xf32>
    %440 = vector.broadcast %cst_128 : f32 to vector<1x8xf32>
    %441 = arith.minimumf %440, %439 : vector<1x8xf32>
    %442 = math.floor %437 : vector<1x8xf32>
    %443 = arith.fptosi %442 : vector<1x8xf32> to vector<1x8xi32>
    %444 = math.floor %441 : vector<1x8xf32>
    %445 = arith.fptosi %444 : vector<1x8xf32> to vector<1x8xi32>
    %cst_129 = arith.constant 9.99999997E-7 : f32
    %446 = vector.broadcast %cst_129 : f32 to vector<1x8xf32>
    %447 = arith.cmpf ogt, %413, %446 : vector<1x8xf32>
    %c0_i32_130 = arith.constant 0 : i32
    %448 = vector.broadcast %c0_i32_130 : i32 to vector<1x8xi32>
    %449 = arith.cmpi sge, %443, %448 : vector<1x8xi32>
    %450 = arith.andi %447, %449 : vector<1x8xi1>
    %c4_i32 = arith.constant 4 : i32
    %451 = vector.broadcast %c4_i32 : i32 to vector<1x8xi32>
    %452 = arith.cmpi slt, %443, %451 : vector<1x8xi32>
    %453 = arith.andi %450, %452 : vector<1x8xi1>
    %c0_i32_131 = arith.constant 0 : i32
    %454 = vector.broadcast %c0_i32_131 : i32 to vector<1x8xi32>
    %455 = arith.cmpi sge, %445, %454 : vector<1x8xi32>
    %456 = arith.andi %453, %455 : vector<1x8xi1>
    %c4_i32_132 = arith.constant 4 : i32
    %457 = vector.broadcast %c4_i32_132 : i32 to vector<1x8xi32>
    %458 = arith.cmpi slt, %445, %457 : vector<1x8xi32>
    %459 = arith.andi %456, %458 : vector<1x8xi1>
    %c4_i32_133 = arith.constant 4 : i32
    %460 = vector.broadcast %c4_i32_133 : i32 to vector<1x8xi32>
    %461 = arith.muli %445, %460 : vector<1x8xi32>
    %462 = arith.addi %461, %443 : vector<1x8xi32>
    %c-1_i32_134 = arith.constant -1 : i32
    %463 = vector.broadcast %c-1_i32_134 : i32 to vector<1x8xi32>
    %464 = arith.select %459, %462, %463 : vector<1x8xi1>, vector<1x8xi32>
    %465 = arith.truncf %201 : vector<64x8xf32> to vector<64x8xbf16>
    %cst_135 = arith.constant 0.000000e+00 : f32
    %466 = vector.broadcast %cst_135 : f32 to vector<64x16xf32>
    %467 = tpu.iota {dimensions = array<i32: 0>} : vector<16x8xi32>
    %468 = vector.broadcast %464 : vector<1x8xi32> to vector<16x8xi32>
    %469 = arith.cmpi eq, %467, %468 : vector<16x8xi32>
    %470 = arith.extui %469 : vector<16x8xi1> to vector<16x8xi32>
    %471 = arith.sitofp %470 : vector<16x8xi32> to vector<16x8xf32>
    %472 = arith.truncf %471 : vector<16x8xf32> to vector<16x8xbf16>
    %cst_136 = arith.constant dense<0.000000e+00> : vector<64x16xf32>
    %473 = tpu.matmul %465, %472, %cst_136 {dimension_numbers = #tpu.dot_dimension_numbers<[1], [1], [0], [0], [0, 0, 1, 0], [], []>} : vector<64x8xbf16>, vector<16x8xbf16>, vector<64x16xf32> -> vector<64x16xf32>
    %474 = arith.addf %466, %473 : vector<64x16xf32>
    %c0_137 = arith.constant 0 : index
    %c0_138 = arith.constant 0 : index
    %c0_139 = arith.constant 0 : index
    %475 = vector.load %arg23[%c0_137, %c0_138, %c0_139] : memref<1x16x256xf32, #tpu.memory_space<vmem>>, vector<1x16x256xf32>
    %476 = vector.shape_cast %475 : vector<1x16x256xf32> to vector<16x256xf32>
    %477 = vector.shape_cast %292 : vector<16x256xf32> to vector<1x16x256xf32>
    tpu.vector_store %arg23[%c0_137, %c0_138, %c0_139], %477 {strides = array<i32>} : memref<1x16x256xf32, #tpu.memory_space<vmem>>, vector<1x16x256xf32>,
    %c0_140 = arith.constant 0 : index
    %c0_141 = arith.constant 0 : index
    %c0_142 = arith.constant 0 : index
    %478 = vector.load %arg24[%c0_140, %c0_141, %c0_142] : memref<1x32x64xf32, #tpu.memory_space<vmem>>, vector<1x32x64xf32>
    %479 = vector.shape_cast %478 : vector<1x32x64xf32> to vector<32x64xf32>
    %480 = vector.shape_cast %383 : vector<32x64xf32> to vector<1x32x64xf32>
    tpu.vector_store %arg24[%c0_140, %c0_141, %c0_142], %480 {strides = array<i32>} : memref<1x32x64xf32, #tpu.memory_space<vmem>>, vector<1x32x64xf32>,
    %c0_143 = arith.constant 0 : index
    %c0_144 = arith.constant 0 : index
    %c0_145 = arith.constant 0 : index
    %481 = vector.load %arg25[%c0_143, %c0_144, %c0_145] : memref<1x64x16xf32, #tpu.memory_space<vmem>>, vector<1x64x16xf32>
    %482 = vector.shape_cast %481 : vector<1x64x16xf32> to vector<64x16xf32>
    %483 = vector.shape_cast %474 : vector<64x16xf32> to vector<1x64x16xf32>
    tpu.vector_store %arg25[%c0_143, %c0_144, %c0_145], %483 {strides = array<i32>} : memref<1x64x16xf32, #tpu.memory_space<vmem>>, vector<1x64x16xf32>,
    %c0_146 = arith.constant 0 : index
    %c0_147 = arith.constant 0 : index
    %484 = vector.load %arg16[%c0_146, %c0_147] : memref<3x16xf32, #tpu.memory_space<vmem>>, vector<3x16xf32>
    %cst_148 = arith.constant dense<0.000000e+00> : vector<3x256xf32>
    %485 = tpu.matmul %484, %292, %cst_148 {dimension_numbers = #tpu.dot_dimension_numbers<[1], [0], [0], [1], [0, 0, 1, 1], [], []>} : vector<3x16xf32>, vector<16x256xf32>, vector<3x256xf32> -> vector<3x256xf32>
    %c0_149 = arith.constant 0 : index
    %c0_150 = arith.constant 0 : index
    %486 = vector.load %arg17[%c0_149, %c0_150] : memref<3x32xf32, #tpu.memory_space<vmem>>, vector<3x32xf32>
    %cst_151 = arith.constant dense<0.000000e+00> : vector<3x64xf32>
    %487 = tpu.matmul %486, %383, %cst_151 {dimension_numbers = #tpu.dot_dimension_numbers<[1], [0], [0], [1], [0, 0, 1, 1], [], []>} : vector<3x32xf32>, vector<32x64xf32>, vector<3x64xf32> -> vector<3x64xf32>
    %c0_152 = arith.constant 0 : index
    %c0_153 = arith.constant 0 : index
    %488 = vector.load %arg18[%c0_152, %c0_153] : memref<3x64xf32, #tpu.memory_space<vmem>>, vector<3x64xf32>
    %cst_154 = arith.constant dense<0.000000e+00> : vector<3x16xf32>
    %489 = tpu.matmul %488, %474, %cst_154 {dimension_numbers = #tpu.dot_dimension_numbers<[1], [0], [0], [1], [0, 0, 1, 1], [], []>} : vector<3x64xf32>, vector<64x16xf32>, vector<3x16xf32> -> vector<3x16xf32>
    %490 = arith.truncf %487 : vector<3x64xf32> to vector<3x64xbf16>
    %c0_155 = arith.constant 0 : index
    %c0_156 = arith.constant 0 : index
    %491 = vector.load %arg20[%c0_155, %c0_156] : memref<64x256xbf16, #tpu.memory_space<vmem>>, vector<64x256xbf16>
    %cst_157 = arith.constant dense<0.000000e+00> : vector<3x256xf32>
    %492 = tpu.matmul %490, %491, %cst_157 {dimension_numbers = #tpu.dot_dimension_numbers<[1], [0], [0], [1], [0, 0, 1, 1], [], []>} : vector<3x64xbf16>, vector<64x256xbf16>, vector<3x256xf32> -> vector<3x256xf32>
    %493 = arith.addf %485, %492 : vector<3x256xf32>
    %494 = arith.truncf %489 : vector<3x16xf32> to vector<3x16xbf16>
    %c0_158 = arith.constant 0 : index
    %c0_159 = arith.constant 0 : index
    %495 = vector.load %arg21[%c0_158, %c0_159] : memref<16x256xbf16, #tpu.memory_space<vmem>>, vector<16x256xbf16>
    %cst_160 = arith.constant dense<0.000000e+00> : vector<3x256xf32>
    %496 = tpu.matmul %494, %495, %cst_160 {dimension_numbers = #tpu.dot_dimension_numbers<[1], [0], [0], [1], [0, 0, 1, 1], [], []>} : vector<3x16xbf16>, vector<16x256xbf16>, vector<3x256xf32> -> vector<3x256xf32>
    %497 = arith.addf %493, %496 : vector<3x256xf32>
    %c0_161 = arith.constant 0 : index
    %c0_162 = arith.constant 0 : index
    %498 = vector.load %arg19[%c0_161, %c0_162] : memref<3x1xf32, #tpu.memory_space<vmem>>, vector<3x1xf32>
    %499 = vector.broadcast %498 : vector<3x1xf32> to vector<3x256xf32>
    %500 = arith.addf %497, %499 : vector<3x256xf32>
    %501 = math.tanh %500 : vector<3x256xf32>
    %c0_163 = arith.constant 0 : index
    %c0_164 = arith.constant 0 : index
    %c0_165 = arith.constant 0 : index
    %502 = vector.load %arg22[%c0_163, %c0_164, %c0_165] : memref<1x3x256xf32, #tpu.memory_space<vmem>>, vector<1x3x256xf32>
    %503 = vector.shape_cast %502 : vector<1x3x256xf32> to vector<3x256xf32>
    %504 = vector.shape_cast %501 : vector<3x256xf32> to vector<1x3x256xf32>
    tpu.vector_store %arg22[%c0_163, %c0_164, %c0_165], %504 {strides = array<i32>} : memref<1x3x256xf32, #tpu.memory_space<vmem>>, vector<1x3x256xf32>,
    return
  }
  func.func @transform_0(%arg0: i32) -> (i32, i32) {
    %c0_i32 = arith.constant 0 : i32
    %c0_i32_0 = arith.constant 0 : i32
    %c0_i32_1 = arith.constant 0 : i32
    return %c0_i32, %c0_i32_0 : i32, i32
  }
  func.func @transform_1(%arg0: i32) -> (i32, i32) {
    %c0_i32 = arith.constant 0 : i32
    %c0_i32_0 = arith.constant 0 : i32
    %c0_i32_1 = arith.constant 0 : i32
    return %c0_i32, %c0_i32_0 : i32, i32
  }
  func.func @transform_2(%arg0: i32) -> (i32, i32, i32) {
    %c0_i32 = arith.constant 0 : i32
    %c0_i32_0 = arith.constant 0 : i32
    %c0_i32_1 = arith.constant 0 : i32
    return %arg0, %c0_i32, %c0_i32_0 : i32, i32, i32
  }
  func.func @transform_3(%arg0: i32) -> (i32, i32, i32) {
    %c0_i32 = arith.constant 0 : i32
    %c0_i32_0 = arith.constant 0 : i32
    %c0_i32_1 = arith.constant 0 : i32
    return %arg0, %c0_i32, %c0_i32_0 : i32, i32, i32
  }
  func.func @transform_4(%arg0: i32) -> (i32, i32, i32) {
    %c0_i32 = arith.constant 0 : i32
    %c0_i32_0 = arith.constant 0 : i32
    %c0_i32_1 = arith.constant 0 : i32
    return %arg0, %c0_i32, %c0_i32_0 : i32, i32, i32
  }
  func.func @transform_5(%arg0: i32) -> (i32, i32, i32) {
    %c0_i32 = arith.constant 0 : i32
    %c0_i32_0 = arith.constant 0 : i32
    %c0_i32_1 = arith.constant 0 : i32
    return %arg0, %c0_i32, %c0_i32_0 : i32, i32, i32
  }
  func.func @transform_6(%arg0: i32) -> (i32, i32, i32) {
    %c0_i32 = arith.constant 0 : i32
    %c0_i32_0 = arith.constant 0 : i32
    %c0_i32_1 = arith.constant 0 : i32
    return %arg0, %c0_i32, %c0_i32_0 : i32, i32, i32
  }
  func.func @transform_7(%arg0: i32) -> (i32, i32, i32) {
    %c0_i32 = arith.constant 0 : i32
    %c0_i32_0 = arith.constant 0 : i32
    %c0_i32_1 = arith.constant 0 : i32
    return %arg0, %c0_i32, %c0_i32_0 : i32, i32, i32
  }
  func.func @transform_8(%arg0: i32) -> (i32, i32) {
    %c0_i32 = arith.constant 0 : i32
    %c0_i32_0 = arith.constant 0 : i32
    %c0_i32_1 = arith.constant 0 : i32
    return %c0_i32, %c0_i32_0 : i32, i32
  }
  func.func @transform_9(%arg0: i32) -> (i32, i32) {
    %c0_i32 = arith.constant 0 : i32
    %c0_i32_0 = arith.constant 0 : i32
    %c0_i32_1 = arith.constant 0 : i32
    return %c0_i32, %c0_i32_0 : i32, i32
  }
  func.func @transform_10(%arg0: i32) -> (i32, i32) {
    %c0_i32 = arith.constant 0 : i32
    %c0_i32_0 = arith.constant 0 : i32
    %c0_i32_1 = arith.constant 0 : i32
    return %c0_i32, %c0_i32_0 : i32, i32
  }
  func.func @transform_11(%arg0: i32) -> (i32, i32) {
    %c0_i32 = arith.constant 0 : i32
    %c0_i32_0 = arith.constant 0 : i32
    %c0_i32_1 = arith.constant 0 : i32
    return %c0_i32, %c0_i32_0 : i32, i32
  }
  func.func @transform_12(%arg0: i32) -> (i32, i32) {
    %c0_i32 = arith.constant 0 : i32
    %c0_i32_0 = arith.constant 0 : i32
    %c0_i32_1 = arith.constant 0 : i32
    return %c0_i32, %c0_i32_0 : i32, i32
  }
  func.func @transform_13(%arg0: i32) -> (i32, i32) {
    %c0_i32 = arith.constant 0 : i32
    %c0_i32_0 = arith.constant 0 : i32
    %c0_i32_1 = arith.constant 0 : i32
    return %c0_i32, %c0_i32_0 : i32, i32
  }
  func.func @transform_14(%arg0: i32) -> (i32, i32) {
    %c0_i32 = arith.constant 0 : i32
    %c0_i32_0 = arith.constant 0 : i32
    %c0_i32_1 = arith.constant 0 : i32
    return %c0_i32, %c0_i32_0 : i32, i32
  }
  func.func @transform_15(%arg0: i32) -> (i32, i32) {
    %c0_i32 = arith.constant 0 : i32
    %c0_i32_0 = arith.constant 0 : i32
    %c0_i32_1 = arith.constant 0 : i32
    return %c0_i32, %c0_i32_0 : i32, i32
  }
  func.func @transform_16(%arg0: i32) -> (i32, i32) {
    %c0_i32 = arith.constant 0 : i32
    %c0_i32_0 = arith.constant 0 : i32
    %c0_i32_1 = arith.constant 0 : i32
    return %c0_i32, %c0_i32_0 : i32, i32
  }
  func.func @transform_17(%arg0: i32) -> (i32, i32) {
    %c0_i32 = arith.constant 0 : i32
    %c0_i32_0 = arith.constant 0 : i32
    %c0_i32_1 = arith.constant 0 : i32
    return %c0_i32, %c0_i32_0 : i32, i32
  }
  func.func @transform_18(%arg0: i32) -> (i32, i32) {
    %c0_i32 = arith.constant 0 : i32
    %c0_i32_0 = arith.constant 0 : i32
    %c0_i32_1 = arith.constant 0 : i32
    return %c0_i32, %c0_i32_0 : i32, i32
  }
  func.func @transform_19(%arg0: i32) -> (i32, i32) {
    %c0_i32 = arith.constant 0 : i32
    %c0_i32_0 = arith.constant 0 : i32
    %c0_i32_1 = arith.constant 0 : i32
    return %c0_i32, %c0_i32_0 : i32, i32
  }
  func.func @transform_20(%arg0: i32) -> (i32, i32) {
    %c0_i32 = arith.constant 0 : i32
    %c0_i32_0 = arith.constant 0 : i32
    %c0_i32_1 = arith.constant 0 : i32
    return %c0_i32, %c0_i32_0 : i32, i32
  }
  func.func @transform_21(%arg0: i32) -> (i32, i32, i32) {
    %c0_i32 = arith.constant 0 : i32
    %c0_i32_0 = arith.constant 0 : i32
    %c0_i32_1 = arith.constant 0 : i32
    return %arg0, %c0_i32, %c0_i32_0 : i32, i32, i32
  }
  func.func @transform_22(%arg0: i32) -> (i32, i32, i32) {
    %c0_i32 = arith.constant 0 : i32
    %c0_i32_0 = arith.constant 0 : i32
    %c0_i32_1 = arith.constant 0 : i32
    return %arg0, %c0_i32, %c0_i32_0 : i32, i32, i32
  }
  func.func @transform_23(%arg0: i32) -> (i32, i32, i32) {
    %c0_i32 = arith.constant 0 : i32
    %c0_i32_0 = arith.constant 0 : i32
    %c0_i32_1 = arith.constant 0 : i32
    return %arg0, %c0_i32, %c0_i32_0 : i32, i32, i32
  }
  func.func @transform_24(%arg0: i32) -> (i32, i32, i32) {
    %c0_i32 = arith.constant 0 : i32
    %c0_i32_0 = arith.constant 0 : i32
    %c0_i32_1 = arith.constant 0 : i32
    return %arg0, %c0_i32, %c0_i32_0 : i32, i32, i32
  }
}

</mosaic_0001>

<bundles_post_ra>
// kernel: point2image_forward.1
= control target key start
LH: loop header
LB: loop body
LE: loop exit
PB: predicated region body
PF: predicated region fallthrough
CT: control target
= control target key end

     0   :  { %s3609_s0 = inlined_call_operand.vmem [shape: f32[2,12], index: 0, kind: input, shape index: {}]   ;;  %s3610_s1 = inlined_call_operand.vmem [shape: f32[2,4], index: 1, kind: input, shape index: {}]   ;;  %s3611_s2 = inlined_call_operand.vmem [shape: f32[2,3,32], index: 2, kind: input, shape index: {}]   ;;  %s3612_s3 = inlined_call_operand.vmem [shape: f32[2,3,32], index: 3, kind: input, shape index: {}]   ;;  %s3613_s4 = inlined_call_operand.vmem [shape: f32[2,3,16], index: 4, kind: input, shape index: {}]   ;;  %s3614_s5 = inlined_call_operand.vmem [shape: f32[2,3,16], index: 5, kind: input, shape index: {}]   ;;  %s3615_s6 = inlined_call_operand.vmem [shape: f32[2,3,8], index: 6, kind: input, shape index: {}]   ;;  %s3616_s7 = inlined_call_operand.vmem [shape: f32[2,3,8], index: 7, kind: input, shape index: {}]   ;;  %s3617_s8 = inlined_call_operand.vmem [shape: f32[16,3], index: 8, kind: input, shape index: {}]   ;;  %s3618_s9 = inlined_call_operand.vmem [shape: f32[16,3], index: 9, kind: input, shape index: {}]   ;;  %s3619_s10 = inlined_call_operand.vmem [shape: f32[16,1], index: 10, kind: input, shape index: {}]   ;;  %s3620_s11 = inlined_call_operand.vmem [shape: f32[32,16], index: 11, kind: input, shape index: {}]   ;;  %s3621_s12 = inlined_call_operand.vmem [shape: f32[32,1], index: 12, kind: input, shape index: {}]   ;;  %s3622_s13 = inlined_call_operand.vmem [shape: f32[64,32], index: 13, kind: input, shape index: {}]   ;;  %s3623_s14 = inlined_call_operand.vmem [shape: f32[64,1], index: 14, kind: input, shape index: {}]   ;;  %s3624_s15 = inlined_call_operand.vmem [shape: f32[3,16], index: 15, kind: input, shape index: {}]   ;;  %s3625_s16 = inlined_call_operand.vmem [shape: f32[3,32], index: 16, kind: input, shape index: {}]   ;;  %s3626_s17 = inlined_call_operand.vmem [shape: f32[3,64], index: 17, kind: input, shape index: {}]   ;;  %s3627_s18 = inlined_call_operand.vmem [shape: f32[3,1], index: 18, kind: input, shape index: {}]   ;;  %s3628_s19 = inlined_call_operand.vmem [shape: bf16[64,256], index: 19, kind: input, shape index: {}]   ;;  %s3629_s20 = inlined_call_operand.vmem [shape: bf16[16,256], index: 20, kind: input, shape index: {}]   ;;  %s3630_s21 = inlined_call_operand.vmem [shape: f32[2,3,256], index: 21, kind: output, shape index: {0}]   ;;  %s3631_s22 = inlined_call_operand.vmem [shape: f32[2,16,256], index: 22, kind: output, shape index: {1}]   ;;  %s3632_s23 = inlined_call_operand.vmem [shape: f32[2,32,64], index: 23, kind: output, shape index: {2}]   ;;  %s3633_s24 = inlined_call_operand.vmem [shape: f32[2,64,16], index: 24, kind: output, shape index: {3}]  }
   0x1   :  { %3641 = sst [smem:[#allocation9_spill]] %s3609_s0 }
   0x2   :  { %3642 = sst [smem:[#allocation10_spill]] %s3610_s1 }
   0x3   :  { %3643 = sst [smem:[#allocation11_spill]] %s3611_s2 }
   0x4   :  { %3644 = sst [smem:[#allocation12_spill]] %s3612_s3 }
   0x5   :  { %3645 = sst [smem:[#allocation13_spill]] %s3613_s4 }
   0x6   :  { %3646 = sst [smem:[#allocation14_spill]] %s3614_s5 }
   0x7   :  { %3647 = sst [smem:[#allocation15_spill]] %s3615_s6 }
   0x8   :  { %3648 = sst [smem:[#allocation16_spill]] %s3616_s7 }
   0x9   :  { %3649 = sst [smem:[#allocation17_spill]] %s3617_s8 }
   0xa   :  { %3650 = sst [smem:[#allocation18_spill]] %s3624_s15 }
   0xb   :  { %3651 = sst [smem:[#allocation19_spill]] %s3626_s17 }
   0xc   :  { %3652 = sst [smem:[#allocation20_spill]] %s3628_s19 }
   0xd   :  { %3653 = sst [smem:[#allocation21_spill]] %s3629_s20 }
   0xe   :  { %3654 = sst [smem:[#allocation22_spill]] %s3630_s21 }
   0xf   :  { %30 = vsyncpa [#allocation3], 0 }
  0x10   :  { %31 = vsyncpa [#allocation5], 0  ;;  %s2855_s5 = smov 0  }
  0x11 LB: > { %3655 = sst [smem:[#allocation8_spill]] %s2724_s5  ;;  %s2451_s26 = sadd.s32 4294967295, %s2724_s5   ;;  %s2724_s5 = sphi %s2855_s5, %s37_s5  }
  0x12   : > { %p2453_p0 = scmp.ge.s32.totalorder %s2724_s5, 1  ;;  %p617_p1 = scmp.lt.s32.totalorder %s2724_s5, 3 }
  0x13   : > { %s3656_s6 = sld [smem:[#allocation9_spill]]  ;;  %p2651_p3 = scmp.eq.s32.totalorder %s2451_s26, 0 }
  0x14   : > { %p618_p2 = pnand %p2453_p0, %p617_p1  ;;  %s3657_s7 = sld [smem:[#allocation10_spill]] }
  0x15   : > { %s2726_s3 = smov [#allocation2]   ;;  %s2727_s25 = smov [#allocation4]  }
  0x16   : > { %p2644_p4 = pneg %p618_p2 }
  0x18   : > { %p2645_p5 = pnand %p2651_p3, %p2644_p4  ;;  %733 = sbr.rel (%p618_p2) target bundleno = 1021 (0x3fd), region = 104 }
  0x19   : > { %s629_s2 = sshll.u32 %s3656_s6, 4  ;;  %s630_s2 = int_to_ptr.vmem [resolvable:$true] %s629_s2 }
  0x1a   : > { %s639_s30 = sshll.u32 %s3657_s7, 4  ;;  %s640_s30 = int_to_ptr.vmem [resolvable:$true] %s639_s30 }
  0x1b   : > { %2647 = dma.vmem_to_smem (!%p2645_p5), %s630_s2, 32, %s2726_s3, [#allocation3]  }
  0x1c   : > { %2650 = dma.vmem_to_smem (!%p2645_p5), %s640_s30, 32, %s2727_s25, [#allocation5]  }
  0x1d   : > { %2715 = dma.done.wait (%p2651_p3), [#allocation3], 32  }
  0x1e   : > { %2717 = vsyncadd (%p2651_p3), [#allocation3], 4294967264 }
  0x1f   : > { %2719 = dma.done.wait (%p2651_p3), [#allocation5], 32  }
  0x20   : > { %2721 = vsyncadd (%p2651_p3), [#allocation5], 4294967264 }
  0x21   : > { %745 = sfence }
  0x22   : > { %p840_p6 = scmp.lt.s32.totalorder %s2451_s26, 1  ;;  %v2728_v0 = vmov 0   ;;  %v1028_v1 = vld [vmem:[%s3619_s10 + $0x8] sm:$0xff]  ;;  %s2877_s1 = sshll.u32 %s2451_s26, 7  ;;  %vm968_vm0 = vcmask 1042432   ;;  %v2901_v2 = vld [vmem:[%s3618_s9] sm:$0xff] }
  0x23   : > { %2667 = vset.pattern.permute.xlu0 %v2728_v0  ;;  %2668 = vset.pattern.permute.xlu1 %v2728_v0  ;;  %s886_s27 = sld [smem:[#allocation2 + %s2877_s1]]  ;;  %s3637_s28 = sadd.s32 1, %s2877_s1  ;;  %vm961_vm1 = vcmask 23552   ;;  %v1027_v13 = vld [vmem:[%s3619_s10] sm:$0xff]  ;;  %v2961_v16 = vld [vmem:[%s3618_s9 + $0x8] sm:$0xff]  ;;  %vm952_vm2 = vcmask 1040384  }
  0x24   : > { %s3678_s26 = smov (!%p840_p6, %s2451_s26), 1  ;;  %1036 = vperm.xlu0 %2667, %v1028_v1   ;;  %2669 = vset.pattern.permute.xlu2 %v2728_v0  ;;  %s888_s2 = sld [smem:[#allocation2 + %s3637_s28]]  ;;  %vm954_vm3 = vcmask 1041408  }
  0x25   : > { %s2884_s6 = sshll.u32 %s3678_s26, 2  ;;  %s3658_s7 = sld [smem:[#allocation11_spill]] }
  0x26   : > { %s3659_s8 = sld [smem:[#allocation12_spill]]  ;;  %s3639_s20 = sadd.s32 3, %s2877_s1 }
  0x27   : > { %s3660_s15 = sld [smem:[#allocation13_spill]]  ;;  %s895_s0 = sadd.s32 5, %s2877_s1 }
  0x28   : > { %s3662_s3 = sld [smem:[#allocation14_spill]]  ;;  %s897_s21 = sadd.s32 6, %s2877_s1 }
  0x29   : > { %s2931_s28 = sld [smem:[#allocation2 + %s3639_s20]]  ;;  %v2935_v6 = vstv %s886_s27  ;;  %s901_s27 = sadd.s32 8, %s2877_s1 }
  0x2a   : > { %v2944_v9 = vstv %s888_s2  ;;  %s903_s5 = sadd.s32 9, %s2877_s1 }
  0x2b   : > { %s2892_s30 = scalar_lea.vmem %s3658_s7, %s2884_s6  ;;  %s3661_s7 = sld [smem:[#allocation15_spill]] }
  0x2c   : > { %s847_s4 = scalar_lea.vmem %s3659_s8, %s2884_s6  ;;  %s3640_s8 = sadd.s32 2, %s2877_s1  ;;  %v913_v5 = vld [vmem:[%s2892_s30] sm:$0x1]  ;;  %v914_v7 = vld [vmem:[%s2892_s30 + $0x1] sm:$0x1]  ;;  %1031 = vperm.xlu0 %2667, %v1027_v13  }
  0x2d   : > { %s2907_s17 = scalar_lea.vmem %s3660_s15, %s2884_s6  ;;  %v960_v3 = vld [vmem:[%s847_s4] sm:$0x7]  ;;  %s2925_s15 = sld [smem:[#allocation2 + %s3640_s8]]  ;;  %v917_v8 = vmul.f32 %v2935_v6, %v913_v5  ;;  %v919_v11 = vmul.f32 %v2944_v9, %v914_v7 }
  0x2e   : > { %2475 = vmatpush.msk.msra.mxu0 %vm968_vm0, %v960_v3  ;;  %s855_s25 = scalar_lea.vmem %s3662_s3, %s2884_s6  ;;  %s893_s4 = sadd.s32 4, %s2877_s1  ;;  %v1043_v10 = vld [vmem:[%s2907_s17] sm:$0x1]  ;;  %v1044_v12 = vld [vmem:[%s2907_s17 + $0x1] sm:$0x1] }
  0x2f   : > { %2476 = vmatmul.msk.f32.vlgmr.msra.gmra.mxu0 %vm961_vm1, %v2901_v2  ;;  %v1072_v4 = vld [vmem:[%s855_s25] sm:$0x7]  ;;  %s2939_s29 = sld [smem:[#allocation2 + %s893_s4]]  ;;  %s899_s25 = sadd.s32 7, %s2877_s1  ;;  %v1046_v14 = vmul.f32 %v1043_v10, %v2935_v6  ;;  %v1047_v15 = vmul.f32 %v1044_v12, %v2944_v9  ;;  %v920_v17 = vadd.f32 %v919_v11, %v917_v8  ;;  %v2983_v21 = vstv %s2931_s28 }
  0x30   : > { %2481 = vmatpush.msk.msra.mxu2 %vm968_vm0, %v1072_v4  ;;  %s898_s3 = sld [smem:[#allocation2 + %s897_s21]]  ;;  %v915_v18 = vld [vmem:[%s2892_s30 + $0x2] sm:$0x1]  ;;  %s905_s8 = sadd.s32 10, %s2877_s1 }
  0x31   : > { %s2913_s19 = scalar_lea.vmem %s3661_s7, %s2884_s6  ;;  %2482 = vmatmul.msk.f32.vlgmr.msra.gmra.mxu2 %vm961_vm1, %v2901_v2  ;;  %s2947_s7 = sld [smem:[#allocation2 + %s895_s0]]  ;;  %v1045_v23 = vld [vmem:[%s2907_s17 + $0x2] sm:$0x1]  ;;  %v1048_v24 = vadd.f32 %v1047_v15, %v1046_v14 }
  0x32   : > { %s2963_s0 = sld [smem:[#allocation2 + %s899_s25]]  ;;  %s907_s25 = sadd.s32 11, %s2877_s1  ;;  %v3004_v33 = vld [vmem:[%s2913_s19] sm:$0x1]  ;;  %v3007_v34 = vld [vmem:[%s2913_s19 + $0x1] sm:$0x1] }
  0x33   : > { %s2966_s21 = sld [smem:[#allocation2 + %s901_s27]]  ;;  %v2971_v19 = vstv %s2925_s15  ;;  %v1206_v36 = vmul.f32 %v3004_v33, %v2935_v6  ;;  %v1207_v37 = vmul.f32 %v3007_v34, %v2944_v9  ;;  %v1330_v3 = vld [vmem:[%s3623_s14] sm:$0xff]  ;;  %s2610_s4 = sshll.u32 %s3678_s26, 5 }
  0x34   : > { %s2973_s20 = sld [smem:[#allocation2 + %s903_s5]]  ;;  %v922_v20 = vmul.f32 %v2971_v19, %v915_v18  ;;  %v1049_v28 = vmul.f32 %v1045_v23, %v2971_v19  ;;  %v3055_v8 = vld [vmem:[%s2913_s19 + $0x2] sm:$0x1]  ;;  %1340 = vperm.xlu0 %2667, %v1330_v3  }
  0x35   : > { %s2979_s2 = sld [smem:[#allocation2 + %s905_s8]]  ;;  %v2986_v22 = vstv %s2939_s29  ;;  %v1209_v14 = vmul.f32 %v3055_v8, %v2971_v19  ;;  %s3667_s8 = sadd.s32 3, %s2877_s1 }
  0x36   : > { %s2989_s30 = sld [smem:[#allocation2 + %s907_s25]]  ;;  %v923_v25 = vadd.f32 %v922_v20, %v920_v17  ;;  %v927_v26 = vmul.f32 %v2986_v22, %v913_v5  ;;  %v2997_v30 = vstv %s898_s3  ;;  %v1052_v31 = vmul.f32 %v1043_v10, %v2986_v22  ;;  %s3666_s25 = sadd.s32 2, %s2877_s1 }
  0x37   : > { %2477 = vmatmul.msk.f32.gmra.mxu0 %vm961_vm1, %v2961_v16  ;;  %v2993_v27 = vstv %s2947_s7  ;;  %v932_v35 = vmul.f32 %v2997_v30, %v915_v18  ;;  %v1055_v41 = vmul.f32 %v1045_v23, %v2997_v30  ;;  %v1050_v49 = vadd.f32 %v1049_v28, %v1048_v24  ;;  %s3031_s17 = sld [smem:[#allocation4 + %s2877_s1]]  ;;  %s3664_s7 = sadd.s32 1, %s2877_s1 }
  0x38   : > { %v929_v29 = vmul.f32 %v2993_v27, %v914_v7  ;;  %v1053_v32 = vmul.f32 %v1044_v12, %v2993_v27  ;;  %v925_v42 = vadd.f32 %v2983_v21, %v923_v25  ;;  %v3020_v43 = vstv %s2963_s0  ;;  %s3663_s19 = sld [smem:[#allocation16_spill]] }
  0x39   : > { %2483 = vmatmul.msk.f32.gmra.mxu2 %vm961_vm1, %v2961_v16  ;;  %v3015_v39 = vstv %s2966_s21  ;;  %s3068_s3 = sld [smem:[#allocation4 + %s3664_s7]]  ;;  %s3422_s21 = scalar_lea.vmem %s3631_s22, %s2610_s4 }
  0x3a   : > { %v930_v38 = vadd.f32 %v929_v29, %v927_v26  ;;  %v1054_v40 = vadd.f32 %v1053_v32, %v1052_v31  ;;  %v937_v44 = vmul.f32 %v3015_v39, %v913_v5  ;;  %v3024_v45 = vstv %s2973_s20  ;;  %s3665_s27 = sld [smem:[#allocation17_spill]] }
  0x3b   : > { %v939_v47 = vmul.f32 %v3024_v45, %v914_v7  ;;  %v3028_v48 = vstv %s2979_s2  ;;  %v1452_v51 = vmul.f32 %v925_v42, %v2935_v6  ;;  %v1058_v53 = vmul.f32 %v1043_v10, %v3015_v39  ;;  %s3121_s15 = sld [smem:[#allocation4 + %s3667_s8]] }
  0x3c   : > { %v933_v46 = vadd.f32 %v932_v35, %v930_v38  ;;  %v942_v50 = vmul.f32 %v3028_v48, %v915_v18  ;;  %v1056_v52 = vadd.f32 %v1055_v41, %v1054_v40  ;;  %v1458_v56 = vmul.f32 %v2986_v22, %v925_v42  ;;  %s3670_s5 = sld [smem:[#allocation20_spill]] }
  0x3d   : > { %v940_v55 = vadd.f32 %v939_v47, %v937_v44  ;;  %v1059_v57 = vmul.f32 %v1044_v12, %v3024_v45  ;;  %v3040_v58 = vstv %s2989_s30  ;;  %v1464_v59 = vmul.f32 %v3015_v39, %v925_v42  ;;  %s3110_s30 = sld [smem:[#allocation4 + %s3666_s25]]  ;;  %s1752_s1 = smul.f32 0.5, %s3031_s17 }
  0x3e   : > { %v935_v54 = vadd.f32 %v3020_v43, %v933_v46  ;;  %v3044_v60 = vadd.f32 %v1056_v52, %v3020_v43  ;;  %v1061_v61 = vmul.f32 %v1045_v23, %v3028_v48  ;;  %v1051_v5 = vadd.f32 %v1050_v49, %v2983_v21  ;;  %s863_s29 = scalar_lea.vmem %s3663_s19, %s2884_s6  ;;  %s1876_s8 = smul.f32 0.25, %s3031_s17 }
  0x3f   : > { %v943_v62 = vadd.f32 %v942_v50, %v940_v55  ;;  %v1060_v7 = vadd.f32 %v1059_v57, %v1058_v53  ;;  %v1208_v10 = vadd.f32 %v1207_v37, %v1206_v36  ;;  %v1474_v28 = vstv %s3031_s17  ;;  %v1232_v40 = vld [vmem:[%s863_s29] sm:$0x7]  ;;  %v1333_v57 = vld [vmem:[%s3623_s14 + $0x18] sm:$0xff]  ;;  %s1759_s20 = smul.f32 0.5, %s3068_s3  ;;  %s3490_s19 = scalar_lea.vmem %s3632_s23, %s2610_s4 }
  0x40   : > { %v947_v63 = vrot.slane %v935_v54, 7  ;;  %v1453_v0 = vmul.f32 %v935_v54, %v2944_v9  ;;  %v1459_v1 = vmul.f32 %v935_v54, %v2993_v27  ;;  %v1465_v4 = vmul.f32 %v3024_v45, %v935_v54  ;;  %v3079_v32 = vld [vmem:[%s3665_s27] sm:$0xff]  ;;  %v3096_v50 = vld [vmem:[%s3665_s27 + $0x8] sm:$0xff]  ;;  %1355 = vperm.xlu0 %2667, %v1333_v57   ;;  %s3672_s0 = sld [smem:[#allocation19_spill]] }
  0x41   : > { %v945_v11 = vadd.f32 %v3040_v58, %v943_v62  ;;  %v1062_v18 = vadd.f32 %v1061_v61, %v1060_v7  ;;  %v1065_v20 = vrot.slane %v3044_v60, 7  ;;  %v1731_v44 = vmul.f32 %v3044_v60, %v2944_v9  ;;  %s1763_s7 = smul.f32 0.5, %s3121_s15  ;;  %s3675_s6 = sld [smem:[#allocation22_spill]] }
  0x42   : > { %v1454_v12 = vadd.f32 %v1453_v0, %v1452_v51  ;;  %v1460_v13 = vadd.f32 %v1459_v1, %v1458_v56  ;;  %v953_v15 = vsel %vm952_vm2, %v925_v42, %v947_v63  ;;  %v1466_v17 = vadd.f32 %v1465_v4, %v1464_v59  ;;  %s1887_s28 = smul.f32 0.25, %s3121_s15  ;;  %s3671_s2 = smov %s3670_s5 }
  0x43   : > { %v950_v23 = vrot.slane %v945_v11, 6  ;;  %v1455_v24 = vmul.f32 %v945_v11, %v2971_v19  ;;  %v1461_v25 = vmul.f32 %v945_v11, %v2997_v30  ;;  %v1467_v26 = vmul.f32 %v945_v11, %v3028_v48  ;;  %s1756_s29 = smul.f32 0.5, %s3110_s30 }
  0x44   : > { %v1063_v29 = vadd.f32 %v1062_v18, %v3040_v58  ;;  %v1070_v31 = vsel %vm952_vm2, %v1051_v5, %v1065_v20  ;;  %v1730_v42 = vmul.f32 %v1051_v5, %v2935_v6  ;;  %v1736_v49 = vmul.f32 %v1051_v5, %v2986_v22 }
  0x45   : > { %v955_v35 = vsel %vm954_vm3, %v953_v15, %v950_v23  ;;  %v1456_v36 = vadd.f32 %v1455_v24, %v1454_v12  ;;  %v1462_v37 = vadd.f32 %v1461_v25, %v1460_v13  ;;  %v1468_v38 = vadd.f32 %v1467_v26, %v1466_v17 }
  0x46   : > { %2478 = vmatpush.msk.msra.mxu1 %vm968_vm0, %v955_v35  ;;  %v1068_v41 = vrot.slane %v1063_v29, 6  ;;  %v1733_v46 = vmul.f32 %v1063_v29, %v2971_v19  ;;  %v1210_v51 = vadd.f32 %v1209_v14, %v1208_v10  ;;  %v1212_v52 = vmul.f32 %v3004_v33, %v2986_v22 }
  0x47   : > { %v3088_v47 = vadd.f32 %v1468_v38, %v3040_v58  ;;  %2479 = vmatmul.msk.f32.vlgmr.msra.gmra.mxu1 %vm961_vm1, %v3079_v32  ;;  %v1732_v54 = vadd.f32 %v1731_v44, %v1730_v42  ;;  %v1737_v55 = vmul.f32 %v3044_v60, %v2993_v27  ;;  %v1739_v56 = vmul.f32 %v1063_v29, %v2997_v30 }
  0x48   : > { %v1071_v53 = vsel %vm954_vm3, %v1070_v31, %v1068_v41  ;;  %2491 = vmatpush.msk.msrb.mxu1 %vm968_vm0, %v1232_v40  ;;  %v1457_v59 = vadd.f32 %v1456_v36, %v2983_v21  ;;  %v1463_v61 = vadd.f32 %v1462_v37, %v3020_v43  ;;  %v1213_v63 = vmul.f32 %v3007_v34, %v2993_v27  ;;  %v1336_v36 = vld [vmem:[%s3623_s14 + $0x30] sm:$0xff] }
  0x49   : > { %v1470_v62 = vand.u32 2147483647, %v3088_v47  ;;  %2623 = vmatpush.msk.msra.mxu3 %vm968_vm0, %v1071_v53  ;;  %2484 = vmatpush.msk.msrb.mxu0 %vm968_vm0, %v1071_v53  ;;  %v1734_v0 = vadd.f32 %v1733_v46, %v1732_v54  ;;  %v1738_v1 = vadd.f32 %v1737_v55, %v1736_v49  ;;  %v1742_v3 = vmul.f32 %v1051_v5, %v3015_v39 }
  0x4a   : > { %v1743_v4 = vmul.f32 %v3044_v60, %v3024_v45  ;;  %2486 = vmatmul.msk.f32.vlgmr.msra.gmra.mxu3 %vm961_vm1, %v3096_v50  ;;  %v1479_v7 = vstv %s3068_s3  ;;  %v1745_v10 = vmul.f32 %v1063_v29, %v3028_v48  ;;  %2485 = vmatmul.msk.f32.vlgmr.msrb.gmra.mxu0 %vm961_vm1, %v3079_v32  ;;  %v1475_v5 = vmul.f32 %v1474_v28, %v1457_v59 }
  0x4b   : > { %vm1471_vm4 = vcmp.gt.f32.partialorder %v1470_v62, 1e-06  ;;  %v1740_v12 = vadd.f32 %v1739_v56, %v1738_v1  ;;  %v1211_v60 = vadd.f32 %v1210_v51, %v2983_v21  ;;  %v1214_v14 = vadd.f32 %v1213_v63, %v1212_v52  ;;  %1370 = vperm.xlu0 %2667, %v1336_v36  }
  0x4c   : > { %v1472_v11 = vsel %vm1471_vm4, %v3088_v47, 1e-06  ;;  %v1744_v13 = vadd.f32 %v1743_v4, %v1742_v3  ;;  %v1480_v15 = vmul.f32 %v1479_v7, %v1463_v61  ;;  %v1735_v17 = vadd.f32 %v1734_v0, %v2983_v21 }
  0x4d   : > { %2670 = vrcp.f32 %v1472_v11  ;;  %v1215_v20 = vmul.f32 %v3055_v8, %v2997_v30  ;;  %v1218_v23 = vmul.f32 %v3004_v33, %v3015_v39  ;;  %v1219_v24 = vmul.f32 %v3007_v34, %v3024_v45 }
  0x4e   : > { %v1746_v18 = vadd.f32 %v1745_v10, %v1744_v13  ;;  %v1221_v25 = vmul.f32 %v3055_v8, %v3028_v48  ;;  %v1854_v26 = vmul.f32 %v1211_v60, %v2935_v6  ;;  %v1753_v29 = vstv %s1752_s1  ;;  %s1883_s1 = smul.f32 0.25, %s3068_s3  ;;  %s3673_s3 = sld [smem:[#allocation18_spill]] }
  0x4f   : > { %2480 = vmatmul.msk.f32.gmra.mxu1 %vm961_vm1, %v3096_v50  ;;  %v1216_v31 = vadd.f32 %v1215_v20, %v1214_v14  ;;  %v1860_v35 = vmul.f32 %v1211_v60, %v2986_v22  ;;  %v1220_v33 = vadd.f32 %v1219_v24, %v1218_v23  ;;  %v1866_v37 = vmul.f32 %v1211_v60, %v3015_v39 }
  0x50   : > { %v3149_v28 = vadd.f32 %v1746_v18, %v3040_v58  ;;  %v1477_v34 = vstv %s3110_s30  ;;  %v1482_v38 = vstv %s3121_s15  ;;  %v1741_v41 = vadd.f32 %v1740_v12, %v3020_v43 }
  0x51   : > { %v1217_v6 = vadd.f32 %v1216_v31, %v3020_v43  ;;  %v1754_v42 = vmul.f32 %v1753_v29, %v1735_v17  ;;  %v1760_v44 = vstv %s1759_s20  ;;  %v1222_v22 = vadd.f32 %v1221_v25, %v1220_v33  ;;  %s1880_s20 = smul.f32 0.25, %s3110_s30  ;;  %s2612_s30 = sshll.u32 %s3678_s26, 6 }
  0x52   : > { %v1748_v8 = vand.u32 2147483647, %v3149_v28  ;;  %v1761_v3 = vmul.f32 %v1760_v44, %v1741_v41  ;;  %v1757_v13 = vstv %s1756_s29  ;;  %v1505_v14 = vlaneseq  ;;  %s883_s29 = scalar_lea.vmem %s3633_s24, %s2612_s30 }
  0x53   : > { %v2671_v40 = vpop.eup %2670  ;;  %v1225_v51 = vrot.slane %v1217_v6, 7  ;;  %v1223_v52 = vadd.f32 %v1222_v22, %v3040_v58  ;;  %v1855_v53 = vmul.f32 %v1217_v6, %v2944_v9  ;;  %v1861_v54 = vmul.f32 %v1217_v6, %v2993_v27 }
  0x54   : > { %v1476_v46 = vmul.f32 %v2671_v40, %v1475_v5  ;;  %v1481_v49 = vmul.f32 %v2671_v40, %v1480_v15  ;;  %vm1749_vm5 = vcmp.gt.f32.partialorder %v1748_v8, 1e-06  ;;  %v1867_v27 = vmul.f32 %v1217_v6, %v3024_v45 }
  0x55   : > { %v1750_v39 = vsel %vm1749_vm5, %v3149_v28, 1e-06  ;;  %v1230_v57 = vsel %vm952_vm2, %v1211_v60, %v1225_v51  ;;  %v1228_v59 = vrot.slane %v1223_v52, 6  ;;  %v1856_v61 = vadd.f32 %v1855_v53, %v1854_v26  ;;  %v1332_v51 = vld [vmem:[%s3623_s14 + $0x10] sm:$0xff] }
  0x56   : > { %v1478_v55 = vadd.f32 %v1477_v34, %v1476_v46  ;;  %v1483_v56 = vadd.f32 %v1482_v38, %v1481_v49  ;;  %2672 = vrcp.f32 %v1750_v39  ;;  %v1857_v62 = vmul.f32 %v1223_v52, %v2971_v19 }
  0x57   : > { %v1862_v63 = vadd.f32 %v1861_v54, %v1860_v35  ;;  %2492 = vmatmul.msk.f32.vlgmr.msrb.gmra.mxu1 %vm961_vm1, %v2901_v2  ;;  %v1863_v9 = vmul.f32 %v1223_v52, %v2997_v30  ;;  %v1231_v4 = vsel %vm954_vm3, %v1230_v57, %v1228_v59  ;;  %v3177_v10 = vmul.f32 %v1223_v52, %v3028_v48 }
  0x58   : > { %v1484_v0 = vmax.f32 %v1478_v55, -1.0  ;;  %v1486_v1 = vmax.f32 %v1483_v56, -1.0  ;;  %v3174_v7 = vadd.f32 %v1857_v62, %v1856_v61  ;;  %2494 = vmatpush.msk.msrb.mxu2 %vm968_vm0, %v1231_v4  ;;  %v3182_v12 = vadd.f32 %v1867_v27, %v1866_v37 }
  0x59   : > { %v3180_v2 = vadd.f32 %v1863_v9, %v1862_v63  ;;  %2495 = vmatmul.msk.f32.vlgmr.msrb.gmra.mxu2 %vm961_vm1, %v3079_v32  ;;  %v1764_v60 = vstv %s1763_s7  ;;  %vm1492_vm6 = vcmp.gt.f32.partialorder %v3088_v47, 1e-06  ;;  %v3189_v32 = vshrl.u32 %v1505_v14, 7  ;;  %s2609_s7 = sshll.u32 %s3678_s26, 3 }
  0x5a   : > { %v1485_v19 = vmin.f32 %v1484_v0, 16.0  ;;  %v1487_v11 = vmin.f32 %v1486_v1, 16.0  ;;  %vm1774_vm15 = vcmp.gt.f32.partialorder %v3149_v28, 1e-06  ;;  %vm1378_vm0 = vcmask 261120  }
  0x5b   : > { %v1537_v35 = vadd.s32 248, %v3189_v32  ;;  %v1534_v36 = vadd.s32 224, %v3189_v32  ;;  %v1535_v38 = vadd.s32 232, %v3189_v32  ;;  %v2729_v41 = vmov 0.0  }
  0x5c   : > { %v2673_v30 = vpop.eup %2672  ;;  %v1488_v45 = vfloor.f32 %v1485_v19  ;;  %v1490_v5 = vfloor.f32 %v1487_v11  ;;  %v1532_v52 = vadd.s32 208, %v3189_v32  ;;  %v1533_v53 = vadd.s32 216, %v3189_v32 }
  0x5d   : > { %v1755_v15 = vmul.f32 %v2673_v30, %v1754_v42  ;;  %v1762_v48 = vmul.f32 %v2673_v30, %v1761_v3  ;;  %v1530_v61 = vadd.s32 192, %v3189_v32  ;;  %v1531_v62 = vadd.s32 200, %v3189_v32 }
  0x5e   : > { %v2625_v17 = vcvt.f32.s32 %v1488_v45  ;;  %v2627_v18 = vcvt.f32.s32 %v1490_v5  ;;  %v1528_v4 = vadd.s32 176, %v3189_v32  ;;  %v1529_v19 = vadd.s32 184, %v3189_v32 }
  0x5f   : > { %v1758_v20 = vadd.f32 %v1757_v13, %v1755_v15  ;;  %v1765_v23 = vadd.f32 %v1764_v60, %v1762_v48  ;;  %2493 = vmatmul.msk.f32.gmra.mxu1 %vm961_vm1, %v2961_v16  ;;  %v1536_v16 = vadd.s32 240, %v3189_v32  ;;  %v1526_v5 = vadd.s32 160, %v3189_v32 }
  0x60   : > { %vm1493_vm7 = vcmp.ge.s32.totalorder %v2625_v17, 0  ;;  %vm1495_vm8 = vcmp.lt.s32.totalorder %v2625_v17, 16  ;;  %vm1497_vm9 = vcmp.ge.s32.totalorder %v2627_v18, 0  ;;  %vm1499_vm11 = vcmp.lt.s32.totalorder %v2627_v18, 16 }
  0x61   : > { %vm1494_vm10 = vmand %vm1492_vm6, %vm1493_vm7  ;;  %v1501_v24 = vmul.u32 16, %v2627_v18  ;;  %v1766_v25 = vmax.f32 %v1758_v20, -1.0  ;;  %v1768_v26 = vmax.f32 %v1765_v23, -1.0  ;;  %2496 = vmatmul.msk.f32.gmra.mxu2 %vm961_vm1, %v3096_v50  ;;  %v1527_v60 = vadd.s32 168, %v3189_v32 }
  0x62   : > { %vm1496_vm12 = vmand %vm1494_vm10, %vm1495_vm8  ;;  %v1524_v18 = vadd.s32 144, %v3189_v32  ;;  %v1525_v20 = vadd.s32 152, %v3189_v32 }
  0x63   : > { %vm1498_vm13 = vmand %vm1496_vm12, %vm1497_vm9  ;;  %v1502_v29 = vadd.s32 %v2625_v17, %v1501_v24  ;;  %v1767_v31 = vmin.f32 %v1766_v25, 8.0  ;;  %v1769_v47 = vmin.f32 %v1768_v26, 8.0 }
  0x64   : > { %vm1500_vm14 = vmand %vm1498_vm13, %vm1499_vm11 }
  0x65   : > { %v1503_v33 = vsel %vm1500_vm14, %v1502_v29, 4294967295  ;;  %v1770_v37 = vfloor.f32 %v1767_v31  ;;  %v1772_v34 = vfloor.f32 %v1769_v47  ;;  %v1522_v29 = vadd.s32 128, %v3189_v32 }
  0x66   : > { %v3197_v8 = vperm.slane %v1503_v33, 0  ;;  %v1523_v31 = vadd.s32 136, %v3189_v32 }
  0x67   : > { %v2629_v6 = vcvt.f32.s32 %v1770_v37  ;;  %v2631_v40 = vcvt.f32.s32 %v1772_v34 }
  0x68   : > { %vm1569_vm1 = vcmp.eq.s32.totalorder %v1536_v16, %v3197_v8  ;;  %vm1570_vm2 = vcmp.eq.s32.totalorder %v1537_v35, %v3197_v8  ;;  %vm1567_vm3 = vcmp.eq.s32.totalorder %v1534_v36, %v3197_v8  ;;  %vm1568_vm7 = vcmp.eq.s32.totalorder %v1535_v38, %v3197_v8 }
  0x69   : > { %vm1775_vm4 = vcmp.ge.s32.totalorder %v2629_v6, 0  ;;  %vm1777_vm5 = vcmp.lt.s32.totalorder %v2629_v6, 8  ;;  %vm1779_vm6 = vcmp.ge.s32.totalorder %v2631_v40, 0  ;;  %vm1781_vm9 = vcmp.lt.s32.totalorder %v2631_v40, 8 }
  0x6a   : > { %vm1776_vm8 = vmand %vm1774_vm15, %vm1775_vm4  ;;  %v1783_v50 = vmul.u32 8, %v2631_v40  ;;  %v2539_v42 = vsel %vm1569_vm1, 1.0, %v2729_v41  ;;  %v2540_v28 = vsel %vm1570_vm2, 1.0, %v2729_v41  ;;  %v2537_v46 = vsel %vm1567_vm3, 1.0, %v2729_v41 }
  0x6b   : > { %vm1778_vm10 = vmand %vm1776_vm8, %vm1777_vm5  ;;  %v1650_v44 = vpack.c.bf16 %v2540_v28, %v2539_v42  ;;  %v2538_v49 = vsel %vm1568_vm7, 1.0, %v2729_v41  ;;  %vm1565_vm13 = vcmp.eq.s32.totalorder %v1532_v52, %v3197_v8  ;;  %vm1566_vm14 = vcmp.eq.s32.totalorder %v1533_v53, %v3197_v8 }
  0x6c   : > { %vm1780_vm11 = vmand %vm1778_vm10, %vm1779_vm6  ;;  %v3206_v22 = vadd.s32 %v2629_v6, %v1783_v50  ;;  %v1649_v55 = vpack.c.bf16 %v2538_v49, %v2537_v46  ;;  %v2535_v57 = vsel %vm1565_vm13, 1.0, %v2729_v41  ;;  %v2536_v59 = vsel %vm1566_vm14, 1.0, %v2729_v41 }
  0x6d   : > { %vm3210_vm12 = vmand %vm1780_vm11, %vm1781_vm9  ;;  %v1700_v39 = vsel %vm1378_vm0, %v1650_v44, 0  ;;  %v1648_v63 = vpack.c.bf16 %v2536_v59, %v2535_v57  ;;  %vm1563_vm15 = vcmp.eq.s32.totalorder %v1530_v61, %v3197_v8  ;;  %vm1564_vm1 = vcmp.eq.s32.totalorder %v1531_v62, %v3197_v8 }
  0x6e   : > { %v1785_v54 = vsel %vm3210_vm12, %v3206_v22, 4294967295  ;;  %1716 = vmatpush.bf16.xpose.msra.mxu2 %v1700_v39  ;;  %v1697_v56 = vsel %vm1378_vm0, %v1649_v55, 0  ;;  %v2533_v1 = vsel %vm1563_vm15, 1.0, %v2729_v41  ;;  %v2534_v9 = vsel %vm1564_vm1, 1.0, %v2729_v41 }
  0x6f   : > { %v1694_v0 = vsel %vm1378_vm0, %v1648_v63, 0  ;;  %v1647_v27 = vpack.c.bf16 %v2534_v9, %v2533_v1  ;;  %vm1561_vm2 = vcmp.eq.s32.totalorder %v1528_v4, %v3197_v8  ;;  %vm1562_vm3 = vcmp.eq.s32.totalorder %v1529_v19, %v3197_v8 }
  0x70   : > { %v2531_v11 = vsel %vm1561_vm2, 1.0, %v2729_v41  ;;  %v2532_v13 = vsel %vm1562_vm3, 1.0, %v2729_v41  ;;  %vm1559_vm4 = vcmp.eq.s32.totalorder %v1526_v5, %v3197_v8  ;;  %vm1560_vm5 = vcmp.eq.s32.totalorder %v1527_v60, %v3197_v8 }
  0x71   : > { %v1691_v3 = vsel %vm1378_vm0, %v1647_v27, 0  ;;  %v1646_v30 = vpack.c.bf16 %v2532_v13, %v2531_v11  ;;  %v2529_v14 = vsel %vm1559_vm4, 1.0, %v2729_v41  ;;  %v2530_v15 = vsel %vm1560_vm5, 1.0, %v2729_v41  ;;  %v1136_v27 = vld [vmem:[%s3621_s12 + $0x18] sm:$0xff] }
  0x72   : > { %v1645_v48 = vpack.c.bf16 %v2530_v15, %v2529_v14  ;;  %vm1557_vm6 = vcmp.eq.s32.totalorder %v1524_v18, %v3197_v8  ;;  %vm1558_vm7 = vcmp.eq.s32.totalorder %v1525_v20, %v3197_v8  ;;  %vm1555_vm8 = vcmp.eq.s32.totalorder %v1522_v29, %v3197_v8  ;;  %1154 = vperm.xlu1 %2668, %v1136_v27  }
  0x73   : > { %v1688_v45 = vsel %vm1378_vm0, %v1646_v30, 0  ;;  %v2527_v23 = vsel %vm1557_vm6, 1.0, %v2729_v41  ;;  %v2528_v24 = vsel %vm1558_vm7, 1.0, %v2729_v41  ;;  %vm1556_vm9 = vcmp.eq.s32.totalorder %v1523_v31, %v3197_v8 }
  0x74   : > { %v1685_v17 = vsel %vm1378_vm0, %v1645_v48, 0  ;;  %v1644_v25 = vpack.c.bf16 %v2528_v24, %v2527_v23  ;;  %v2525_v47 = vsel %vm1555_vm8, 1.0, %v2729_v41  ;;  %v2526_v16 = vsel %vm1556_vm9, 1.0, %v2729_v41  ;;  %v3307_v23 = vld [vmem:[%s3620_s11 + $0x8] sm:$0xff] }
  0x75   : > { %v1643_v36 = vpack.c.bf16 %v2526_v16, %v2525_v47  ;;  %v1520_v40 = vadd.s32 112, %v3189_v32  ;;  %v1521_v50 = vadd.s32 120, %v3189_v32  ;;  %v1518_v61 = vadd.s32 96, %v3189_v32  ;;  %v1331_v16 = vld [vmem:[%s3623_s14 + $0x8] sm:$0xff] }
  0x76   : > { %1717 = vmatpush.bf16.xpose.msra.mxu2 %v1697_v56  ;;  %v1682_v26 = vsel %vm1378_vm0, %v1644_v25, 0  ;;  %v1519_v62 = vadd.s32 104, %v3189_v32  ;;  %vm1157_vm15 = vcmask 130048   ;;  %v1516_v14 = vadd.s32 80, %v3189_v32 }
  0x77   : > { %v1679_v33 = vsel %vm1378_vm0, %v1643_v36, 0  ;;  %vm1553_vm10 = vcmp.eq.s32.totalorder %v1520_v40, %v3197_v8  ;;  %vm1554_vm11 = vcmp.eq.s32.totalorder %v1521_v50, %v3197_v8  ;;  %vm1551_vm13 = vcmp.eq.s32.totalorder %v1518_v61, %v3197_v8 }
  0x78   : > { %v2523_v56 = vsel %vm1553_vm10, 1.0, %v2729_v41  ;;  %v2524_v57 = vsel %vm1554_vm11, 1.0, %v2729_v41  ;;  %vm1552_vm14 = vcmp.eq.s32.totalorder %v1519_v62, %v3197_v8  ;;  %v2521_v5 = vsel %vm1551_vm13, 1.0, %v2729_v41 }
  0x79   : > { %v1642_v9 = vpack.c.bf16 %v2524_v57, %v2523_v56  ;;  %v2522_v60 = vsel %vm1552_vm14, 1.0, %v2729_v41  ;;  %v1517_v15 = vadd.s32 88, %v3189_v32  ;;  %vm1549_vm1 = vcmp.eq.s32.totalorder %v1516_v14, %v3197_v8 }
  0x7a   : > { %v1641_v48 = vpack.c.bf16 %v2522_v60, %v2521_v5  ;;  %v2519_v24 = vsel %vm1549_vm1, 1.0, %v2729_v41  ;;  %v1514_v29 = vadd.s32 64, %v3189_v32  ;;  %v1515_v31 = vadd.s32 72, %v3189_v32 }
  0x7b   : > { %v1676_v30 = vsel %vm1378_vm0, %v1642_v9, 0  ;;  %vm1550_vm2 = vcmp.eq.s32.totalorder %v1517_v15, %v3197_v8  ;;  %v1512_v50 = vadd.s32 48, %v3189_v32  ;;  %v1511_v62 = vadd.s32 40, %v3189_v32 }
  0x7c   : > { %v1673_v20 = vsel %vm1378_vm0, %v1641_v48, 0  ;;  %v2520_v25 = vsel %vm1550_vm2, 1.0, %v2729_v41  ;;  %vm1547_vm3 = vcmp.eq.s32.totalorder %v1514_v29, %v3197_v8  ;;  %vm1548_vm4 = vcmp.eq.s32.totalorder %v1515_v31, %v3197_v8 }
  0x7d   : > { %v1640_v47 = vpack.c.bf16 %v2520_v25, %v2519_v24  ;;  %vm1545_vm5 = vcmp.eq.s32.totalorder %v1512_v50, %v3197_v8  ;;  %v1788_v9 = vperm.slane %v1785_v54, 0  ;;  %vm1544_vm8 = vcmp.eq.s32.totalorder %v1511_v62, %v3197_v8 }
  0x7e   : > { %1718 = vmatpush.bf16.xpose.msra.mxu2 %v1694_v0  ;;  %v2515_v61 = vsel %vm1545_vm5, 1.0, %v2729_v41  ;;  %vm1539_vm1 = vcmp.eq.s32.totalorder %v3189_v32, %v3197_v8 }
  0x7f   : > { %v1670_v36 = vsel %vm1378_vm0, %v1640_v47, 0  ;;  %vm1795_vm12 = vcmp.eq.s32.totalorder %v1512_v50, %v1788_v9  ;;  %vm1794_vm11 = vcmp.eq.s32.totalorder %v1511_v62, %v1788_v9  ;;  %v2509_v29 = vsel %vm1539_vm1, 1.0, %v2729_v41  ;;  %v2198_v47 = vld [vmem:[%s3627_s18] sm:$0x7] }
  0x80   : > { %v2549_v22 = vsel %vm1795_vm12, 1.0, %v2729_v41  ;;  %v2548_v60 = vsel %vm1794_vm11, 1.0, %v2729_v41  ;;  %vm1789_vm5 = vcmp.eq.s32.totalorder %v3189_v32, %v1788_v9 }
  0x86   : > { %1719 = vmatpush.bf16.xpose.msra.mxu2 %v1691_v3 }
  0x8e   : > { %1720 = vmatpush.bf16.xpose.msra.mxu2 %v1688_v45  ;;  %v3290_v45 = vld [vmem:[%s3620_s11] sm:$0xff] }
  0x96   : > { %1721 = vmatpush.bf16.xpose.msra.mxu2 %v1685_v17  ;;  %v3261_v38 = vpop.permute.xlu0 %1036  ;;  %v1135_v17 = vld [vmem:[%s3621_s12 + $0x10] sm:$0xff] }
  0x97   : > { %1149 = vperm.xlu1 %2668, %v1135_v17  }
  0x9e   : > { %1722 = vmatpush.bf16.xpose.msra.mxu2 %v1682_v26  ;;  %v3267_v46 = vpop.permute.xlu0 %1031 }
  0x9f   : > { %1345 = vperm.xlu1 %2668, %v1331_v16  }
  0xa6   : > { %1723 = vmatpush.bf16.xpose.msra.mxu2 %v1679_v33 }
  0xac   : > { %v989_v35 = vpop.f32.mrf.mxu0 }
  0xb4   : > { %v992_v37 = vpop.f32.mrf.mxu0  ;;  %v1093_v34 = vpop.f32.mrf.mxu2 }
  0xbc   : > { %v1096_v44 = vpop.f32.mrf.mxu2 }
  0xc4   : > { %v1021_v6 = vpop.f32.mrf.mxu1 }
  0xc5   : > { %v1022_v42 = vadd.f32 %v1021_v6, %v989_v35  ;;  %v2518_v6 = vsel %vm1548_vm4, 1.0, %v2729_v41 }
  0xc7   : > { %v1119_v28 = vpop.f32.mrf.mxu0  ;;  %v1039_v52 = vadd.f32 %v3267_v46, %v1022_v42  ;;  %v1513_v42 = vadd.s32 56, %v3189_v32 }
  0xc8   : > { %v1120_v49 = vadd.f32 %v1119_v28, %v1093_v34  ;;  %v2517_v34 = vsel %vm1547_vm3, 1.0, %v2729_v41 }
  0xc9   : > { %v1041_v3 = vmax.f32 %v1039_v52, 0.0  ;;  %vm1546_vm6 = vcmp.eq.s32.totalorder %v1513_v42, %v3197_v8  ;;  %vm1796_vm9 = vcmp.eq.s32.totalorder %v1513_v42, %v1788_v9 }
  0xca   : > { %v1125_v0 = vadd.f32 %v1120_v49, %v3267_v46  ;;  %v1134_v49 = vld [vmem:[%s3621_s12 + $0x8] sm:$0xff]  ;;  %v2550_v54 = vsel %vm1796_vm9, 1.0, %v2729_v41 }
  0xcb   : > { %1144 = vperm.xlu2 %2669, %v1134_v49  }
  0xcc   : > { %v1024_v39 = vpop.f32.mrf.mxu1  ;;  %v1127_v13 = vmax.f32 %v1125_v0, 0.0  ;;  %v1337_v0 = vld [vmem:[%s3623_s14 + $0x38] sm:$0xff] }
  0xcd   : > { %v1122_v53 = vpop.f32.mrf.mxu3  ;;  %v1025_v55 = vadd.f32 %v1024_v39, %v992_v37  ;;  %v3324_v37 = vld [vmem:[%s3620_s11 + $0x10] sm:$0xff]  ;;  %v1334_v39 = vld [vmem:[%s3623_s14 + $0x20] sm:$0xff] }
  0xce   : > { %v1123_v59 = vadd.f32 %v1122_v53, %v1096_v44  ;;  %v1639_v44 = vpack.c.bf16 %v2518_v6, %v2517_v34  ;;  %1360 = vperm.xlu1 %2668, %v1334_v39   ;;  %v2543_v34 = vsel %vm1789_vm5, 1.0, %v2729_v41 }
  0xcf   : > { %v1040_v63 = vadd.f32 %v3261_v38, %v1025_v55 }
  0xd0   : > { %v1126_v1 = vadd.f32 %v1123_v59, %v3261_v38  ;;  %v1667_v56 = vsel %vm1378_vm0, %v1639_v44, 0  ;;  %v1132_v59 = vld [vmem:[%s3620_s11 + $0x18] sm:$0xff] }
  0xd1   : > { %v1042_v4 = vmax.f32 %v1040_v63, 0.0  ;;  %v1133_v63 = vld [vmem:[%s3621_s12] sm:$0xff] }
  0xd2   : > { %v1128_v19 = vmax.f32 %v1126_v1, 0.0 }
  0xd3   : > { %v3282_v11 = vpack.c.bf16 %v1042_v4, %v1041_v3  ;;  %1139 = vperm.xlu2 %2669, %v1133_v63   ;;  %v2514_v4 = vsel %vm1544_vm8, 1.0, %v2729_v41  ;;  %vm1971_vm8 = vcmask 523264  }
  0xd4   : > { %1184 = vmatpush.msra.mxu0 %v1128_v19  ;;  %v1253_v18 = vpop.f32.mrf.mxu1  ;;  %v1508_v19 = vadd.s32 16, %v3189_v32 }
  0xd5   : > { %2542 = vmatmul.msk.bf16.vlgmr.msra.gmra.mxu2 %vm1378_vm0, %v3282_v11 }
  0xd6   : > { %1185 = vmatpush.msra.mxu0 %v1127_v13  ;;  %1375 = vperm.xlu1 %2668, %v1337_v0   ;;  %v1509_v13 = vadd.s32 24, %v3189_v32  ;;  %vm1541_vm13 = vcmp.eq.s32.totalorder %v1508_v19, %v3197_v8  ;;  %vm1791_vm3 = vcmp.eq.s32.totalorder %v1508_v19, %v1788_v9 }
  0xd7   : > { %2487 = vmatmul.msk.f32.vlgmr.msra.gmra.mxu0 %vm1157_vm15, %v3290_v45  ;;  %v2511_v17 = vsel %vm1541_vm13, 1.0, %v2729_v41 }
  0xd8   : > { %1702 = vmatpush.bf16.xpose.msrb.mxu0 %v1676_v30  ;;  %vm1542_vm14 = vcmp.eq.s32.totalorder %v1509_v13, %v3197_v8  ;;  %vm1792_vm4 = vcmp.eq.s32.totalorder %v1509_v13, %v1788_v9 }
  0xdb   : > { %1350 = vperm.xlu2 %2669, %v1332_v51  }
  0xdc   : > { %v1279_v26 = vpop.f32.mrf.mxu2  ;;  %v1256_v35 = vpop.f32.mrf.mxu1 }
  0xdd   : > { %v1280_v33 = vadd.f32 %v1279_v26, %v1253_v18  ;;  %v2512_v18 = vsel %vm1542_vm14, 1.0, %v2729_v41 }
  0xde   : > { %v1636_v24 = vpack.c.bf16 %v2512_v18, %v2511_v17  ;;  %v1323_v17 = vld [vmem:[%s3622_s13 + $0x8] sm:$0xff]  ;;  %v1324_v18 = vld [vmem:[%s3622_s13 + $0x10] sm:$0xff] }
  0xdf   : > { %2488 = vmatmul.msk.f32.gmra.mxu0 %vm1157_vm15, %v3307_v23  ;;  %v1285_v53 = vadd.f32 %v1280_v33, %v3267_v46  ;;  %v1510_v46 = vadd.s32 32, %v3189_v32 }
  0xe0   : > { %1703 = vmatpush.bf16.xpose.msrb.mxu0 %v1673_v20  ;;  %v3386_v20 = vadd.s32 8, %v3189_v32  ;;  %v1658_v26 = vsel %vm1378_vm0, %v1636_v24, 0  ;;  %v1326_v24 = vld [vmem:[%s3622_s13 + $0x20] sm:$0xff] }
  0xe1   : > { %v1287_v57 = vmax.f32 %v1285_v53, 0.0  ;;  %vm1543_vm7 = vcmp.eq.s32.totalorder %v1510_v46, %v3197_v8  ;;  %vm1793_vm10 = vcmp.eq.s32.totalorder %v1510_v46, %v1788_v9 }
  0xe2   : > { %v2513_v3 = vsel %vm1543_vm7, 1.0, %v2729_v41  ;;  %v2547_v5 = vsel %vm1793_vm10, 1.0, %v2729_v41  ;;  %vm1540_vm2 = vcmp.eq.s32.totalorder %v3386_v20, %v3197_v8  ;;  %v2545_v8 = vsel %vm1791_vm3, 1.0, %v2729_v41 }
  0xe3   : > { %v1637_v30 = vpack.c.bf16 %v2514_v4, %v2513_v3  ;;  %v1815_v48 = vpack.c.bf16 %v2548_v60, %v2547_v5  ;;  %v2510_v31 = vsel %vm1540_vm2, 1.0, %v2729_v41 }
  0xe4   : > { %v1282_v40 = vpop.f32.mrf.mxu2  ;;  %v1635_v16 = vpack.c.bf16 %v2510_v31, %v2509_v29  ;;  %v1329_v29 = vld [vmem:[%s3622_s13 + $0x38] sm:$0xff]  ;;  %v1870_v31 = vadd.f32 %v3177_v10, %v3182_v12 }
  0xe5   : > { %v1283_v28 = vadd.f32 %v1282_v40, %v1256_v35  ;;  %v1661_v15 = vsel %vm1378_vm0, %v1637_v30, 0  ;;  %v1830_v25 = vsel %vm1157_vm15, %v1815_v48, 0 }
  0xe6   : > { %v1655_v35 = vsel %vm1378_vm0, %v1635_v16, 0 }
  0xe7   : > { %2489 = vmatmul.msk.f32.gmra.mxu0 %vm1157_vm15, %v3324_v37  ;;  %v1286_v52 = vadd.f32 %v1283_v28, %v3261_v38  ;;  %v2516_v38 = vsel %vm1546_vm6, 1.0, %v2729_v41  ;;  %vm1790_vm6 = vcmp.eq.s32.totalorder %v3386_v20, %v1788_v9 }
  0xe8   : > { %1704 = vmatpush.bf16.xpose.msrb.mxu0 %v1670_v36  ;;  %v1638_v1 = vpack.c.bf16 %v2516_v38, %v2515_v61  ;;  %v2546_v36 = vsel %vm1792_vm4, 1.0, %v2729_v41 }
  0xe9   : > { %v1288_v55 = vmax.f32 %v1286_v52, 0.0  ;;  %v1814_v33 = vpack.c.bf16 %v2546_v36, %v2545_v8  ;;  %v1859_v8 = vadd.f32 %v3174_v7, %v2983_v21  ;;  %v1865_v36 = vadd.f32 %v3180_v2, %v3020_v43 }
  0xea   : > { %v1664_v27 = vsel %vm1378_vm0, %v1638_v1, 0 }
  0xeb   : > { %1303 = vmatpush.msrb.mxu3 %v1288_v55  ;;  %v1155_v55 = vpop.permute.xlu1 %1154 }
  0xed   : > { %1304 = vmatpush.msrb.mxu3 %v1287_v57 }
  0xee   : > { %2497 = vmatmul.msk.f32.vlgmr.msrb.gmra.mxu3 %vm1157_vm15, %v3290_v45  ;;  %v1816_v45 = vpack.c.bf16 %v2550_v54, %v2549_v22 }
  0xef   : > { %2490 = vmatmul.msk.f32.gmra.mxu0 %vm1157_vm15, %v1132_v59 }
  0xf0   : > { %1705 = vmatpush.bf16.xpose.msrb.mxu0 %v1667_v56  ;;  %v1833_v14 = vsel %vm1157_vm15, %v1816_v45, 0 }
  0xf1   : > { %1839 = vmatpush.bf16.xpose.msra.mxu3 %v1833_v14 }
  0xf6   : > { %2498 = vmatmul.msk.f32.gmra.mxu3 %vm1157_vm15, %v3307_v23  ;;  %v1335_v23 = vld [vmem:[%s3623_s14 + $0x28] sm:$0xff] }
  0xf7   : > { %1365 = vperm.xlu2 %2669, %v1335_v23   ;;  %v1325_v23 = vld [vmem:[%s3622_s13 + $0x18] sm:$0xff] }
  0xf8   : > { %1706 = vmatpush.bf16.xpose.msrb.mxu0 %v1664_v27 }
  0xf9   : > { %1840 = vmatpush.bf16.xpose.msra.mxu3 %v1830_v25  ;;  %v1327_v25 = vld [vmem:[%s3622_s13 + $0x28] sm:$0xff] }
  0xfe   : > { %2499 = vmatmul.msk.f32.gmra.mxu3 %vm1157_vm15, %v3324_v37  ;;  %v1827_v37 = vsel %vm1157_vm15, %v1814_v33, 0  ;;  %v1877_v33 = vstv %s1876_s8 }
  0xff   : > { %2201 = vperm.xlu2 %2669, %v2198_v47   ;;  %v1871_v47 = vadd.f32 %v1870_v31, %v3040_v58 }
 0x100   : > { %1707 = vmatpush.bf16.xpose.msrb.mxu0 %v1661_v15  ;;  %v1322_v15 = vld [vmem:[%s3622_s13] sm:$0xff] }
 0x101   : > { %1841 = vmatpush.bf16.xpose.msra.mxu3 %v1827_v37  ;;  %v1872_v16 = vand.u32 2147483647, %v1871_v47  ;;  %v1878_v37 = vmul.f32 %v1877_v33, %v1859_v8  ;;  %vm1898_vm12 = vcmp.gt.f32.partialorder %v1871_v47, 1e-06 }
 0x103   : > { %vm1873_vm7 = vcmp.gt.f32.partialorder %v1872_v16, 1e-06 }
 0x106   : > { %2500 = vmatmul.msk.f32.gmra.mxu3 %vm1157_vm15, %v1132_v59 }
 0x108   : > { %1708 = vmatpush.bf16.xpose.msrb.mxu0 %v1658_v26  ;;  %v1328_v26 = vld [vmem:[%s3622_s13 + $0x30] sm:$0xff] }
 0x109   : > { %v1150_v38 = vpop.permute.xlu1 %1149 }
 0x110   : > { %1709 = vmatpush.bf16.xpose.msrb.mxu0 %v1655_v35  ;;  %v1874_v35 = vsel %vm1873_vm7, %v1871_v47, 1e-06 }
 0x111   : > { %2674 = vrcp.f32 %v1874_v35 }
 0x117   : > { %2541 = vmatmul.msk.bf16.vlgmr.msrb.gmra.mxu0 %vm1378_vm0, %v3282_v11  ;;  %v2544_v11 = vsel %vm1790_vm6, 1.0, %v2729_v41  ;;  %v2675_v10 = vpop.eup %2674  ;;  %vm1922_vm6 = vcmask 64512  }
 0x118   : > { %v1813_v6 = vpack.c.bf16 %v2544_v11, %v2543_v34  ;;  %v1884_v34 = vstv %s1883_s1  ;;  %v1879_v12 = vmul.f32 %v2675_v10, %v1878_v37  ;;  %v1881_v11 = vstv %s1880_s20 }
 0x119   : > { %v1885_v58 = vmul.f32 %v1884_v34, %v1865_v36 }
 0x11a   : > { %v1824_v40 = vsel %vm1157_vm15, %v1813_v6, 0 }
 0x11b   : > { %1842 = vmatpush.bf16.xpose.msra.mxu3 %v1824_v40  ;;  %v1886_v6 = vmul.f32 %v2675_v10, %v1885_v58  ;;  %v1882_v40 = vadd.f32 %v1881_v11, %v1879_v12 }
 0x11d   : > { %v1890_v43 = vmax.f32 %v1882_v40, -1.0 }
 0x11f   : > { %v1891_v2 = vmin.f32 %v1890_v43, 4.0 }
 0x125   : > { %v1145_v50 = vpop.permute.xlu2 %1144 }
 0x12d   : > { %v1140_v28 = vpop.permute.xlu2 %1139 }
 0x154   : > { %v1187_v42 = vpop.f32.mrf.mxu0 }
 0x155   : > { %v1188_v49 = vadd.f32 %v1187_v42, %v1140_v28 }
 0x157   : > { %v1199_v52 = vmax.f32 %v1188_v49, 0.0  ;;  %v1894_v49 = vfloor.f32 %v1891_v2  ;;  %v2587_v2 = vld [vmem:[%s3670_s5 + $0x30] sm:$0xf] }
 0x158   : > { %v3424_v44 = vpop.f32.mrf.mxu2 }
 0x159   : > { %1968 = vst [vmem:[%s3422_s21 + $0x8] sm:$0xff] %v3424_v44 }
 0x15c   : > { %v1190_v39 = vpop.f32.mrf.mxu0 }
 0x15d   : > { %v1191_v53 = vadd.f32 %v1190_v39, %v1145_v50 }
 0x15f   : > { %v1200_v57 = vmax.f32 %v1191_v53, 0.0 }
 0x160   : > { %v3428_v56 = vpop.f32.mrf.mxu2 }
 0x161   : > { %1970 = vst [vmem:[%s3422_s21 + $0x18] sm:$0xff] %v3428_v56  ;;  %v1786_v59 = vpack.c.bf16 %v1200_v57, %v1199_v52  ;;  %v2633_v52 = vcvt.f32.s32 %v1894_v49  ;;  %v2579_v49 = vld [vmem:[%s3671_s2 + $0x20] sm:$0xf] }
 0x163   : > { %2551 = vmatmul.msk.bf16.vlgmr.msra.gmra.mxu3 %vm1157_vm15, %v1786_v59  ;;  %vm1899_vm9 = vcmp.ge.s32.totalorder %v2633_v52, 0  ;;  %vm1901_vm11 = vcmp.lt.s32.totalorder %v2633_v52, 4 }
 0x164   : > { %v1193_v61 = vpop.f32.mrf.mxu0  ;;  %vm1900_vm10 = vmand %vm1898_vm12, %vm1899_vm9 }
 0x165   : > { %v1194_v46 = vadd.f32 %v1193_v61, %v1150_v38  ;;  %vm1902_vm13 = vmand %vm1900_vm10, %vm1901_vm11 }
 0x167   : > { %v1201_v63 = vmax.f32 %v1194_v46, 0.0 }
 0x16c   : > { %v1196_v62 = vpop.f32.mrf.mxu0 }
 0x16d   : > { %v1197_v0 = vadd.f32 %v1196_v62, %v1155_v55 }
 0x16f   : > { %v1202_v1 = vmax.f32 %v1197_v0, 0.0 }
 0x171   : > { %v1787_v9 = vpack.c.bf16 %v1202_v1, %v1201_v63  ;;  %v1306_v27 = vpop.f32.mrf.mxu3 }
 0x172   : > { %v1307_v30 = vadd.f32 %v1306_v27, %v1140_v28 }
 0x173   : > { %2552 = vmatmul.msk.bf16.gmra.mxu3 %vm1157_vm15, %v1787_v9 }
 0x174   : > { %v1318_v14 = vmax.f32 %v1307_v30, 0.0 }
 0x179   : > { %v1309_v3 = vpop.f32.mrf.mxu3 }
 0x17a   : > { %v1310_v22 = vadd.f32 %v1309_v3, %v1145_v50  ;;  %v1888_v50 = vstv %s1887_s28  ;;  %v1346_v3 = vpop.permute.xlu1 %1345  ;;  %s3674_s28 = sld [smem:[#allocation21_spill]] }
 0x17b   : > { %v1889_v42 = vadd.f32 %v1888_v50, %v1886_v6  ;;  %v1985_v50 = vld [vmem:[%s3625_s16] sm:$0x7] }
 0x17c   : > { %v1319_v5 = vmax.f32 %v1310_v22, 0.0 }
 0x17d   : > { %v1892_v7 = vmax.f32 %v1889_v42, -1.0 }
 0x17f   : > { %v1893_v28 = vmin.f32 %v1892_v7, 4.0 }
 0x181   : > { %v1312_v4 = vpop.f32.mrf.mxu3  ;;  %v1896_v39 = vfloor.f32 %v1893_v28  ;;  %v2620_v28 = vld [vmem:[%s3671_s2 + $0x34] sm:$0xf0] }
 0x182   : > { %v1313_v13 = vadd.f32 %v1312_v4, %v1150_v38 }
 0x183   : > { %v2635_v53 = vcvt.f32.s32 %v1896_v39  ;;  %v2588_v39 = vor.u32 %v2620_v28, %v2587_v2 }
 0x184   : > { %v1320_v45 = vmax.f32 %v1313_v13, 0.0 }
 0x185   : > { %v1907_v57 = vmul.u32 4, %v2635_v53  ;;  %vm1903_vm14 = vcmp.ge.s32.totalorder %v2635_v53, 0  ;;  %vm1905_vm2 = vcmp.lt.s32.totalorder %v2635_v53, 4  ;;  %2089 = vmatpush.bf16.msrb.mxu2 %v2588_v39 }
 0x186   : > { %vm1904_vm1 = vmand %vm1902_vm13, %vm1903_vm14 }
 0x187   : > { %v1908_v59 = vadd.s32 %v2633_v52, %v1907_v57  ;;  %vm1906_vm3 = vmand %vm1904_vm1, %vm1905_vm2  ;;  %v2618_v52 = vld [vmem:[%s3671_s2 + $0x24] sm:$0xf0]  ;;  %v2571_v57 = vld [vmem:[%s3671_s2 + $0x10] sm:$0xf] }
 0x189   : > { %v1315_v19 = vpop.f32.mrf.mxu3  ;;  %v1909_v61 = vsel %vm1906_vm3, %v1908_v59, 4294967295  ;;  %v2616_v59 = vld [vmem:[%s3671_s2 + $0x14] sm:$0xf0] }
 0x18a   : > { %v1316_v51 = vadd.f32 %v1315_v19, %v1155_v55  ;;  %v1914_v38 = vperm.slane %v1909_v61, 0  ;;  %v2572_v61 = vor.u32 %v2616_v59, %v2571_v57 }
 0x18c   : > { %v1321_v54 = vmax.f32 %v1316_v51, 0.0  ;;  %vm1915_vm4 = vcmp.eq.s32.totalorder %v3189_v32, %v1914_v38  ;;  %vm1916_vm5 = vcmp.eq.s32.totalorder %v3386_v20, %v1914_v38  ;;  %v1341_v20 = vpop.permute.xlu0 %1340 }
 0x18d   : > { %v2553_v62 = vsel %vm1915_vm4, 1.0, %v2729_v41  ;;  %v2554_v63 = vsel %vm1916_vm5, 1.0, %v2729_v41 }
 0x18e   : > { %1415 = vmatpush.msra.mxu1 %v1321_v54  ;;  %v1921_v0 = vpack.c.bf16 %v2554_v63, %v2553_v62  ;;  %v1351_v54 = vpop.permute.xlu2 %1350  ;;  %v2563_v62 = vld [vmem:[%s3671_s2] sm:$0xf]  ;;  %v2614_v63 = vld [vmem:[%s3671_s2 + $0x4] sm:$0xf0] }
 0x190   : > { %1416 = vmatpush.msra.mxu1 %v1320_v45  ;;  %v1936_v1 = vsel %vm1922_vm6, %v1921_v0, 0  ;;  %v2619_v0 = vld [vmem:[%s3671_s2 + $0x34] sm:$0xf] }
 0x191   : > { %1945 = vmatpush.bf16.xpose.msrb.mxu3 %v1936_v1  ;;  %v2564_v1 = vor.u32 %v2614_v63, %v2563_v62 }
 0x192   : > { %1417 = vmatpush.msra.mxu1 %v1319_v5 }
 0x194   : > { %v3434_v60 = vpop.f32.mrf.mxu0  ;;  %1418 = vmatpush.msra.mxu1 %v1318_v14  ;;  %v1356_v45 = vpop.permute.xlu0 %1355 }
 0x195   : > { %1967 = vst [vmem:[%s3422_s21] sm:$0xff] %v3434_v60  ;;  %2501 = vmatmul.msk.f32.vlgmr.msra.gmra.mxu1 %vm1378_vm0, %v1322_v15 }
 0x19c   : > { %v3442_v48 = vpop.f32.mrf.mxu0  ;;  %v1371_v36 = vpop.permute.xlu0 %1370 }
 0x19d   : > { %1969 = vst [vmem:[%s3422_s21 + $0x10] sm:$0xff] %v3442_v48  ;;  %2502 = vmatmul.msk.f32.gmra.mxu1 %vm1378_vm0, %v1323_v17  ;;  %s868_s21 = scalar_lea.vmem %s3675_s6, %s2609_s7 }
 0x1a5   : > { %2503 = vmatmul.msk.f32.gmra.mxu1 %vm1378_vm0, %v1324_v18 }
 0x1ad   : > { %2504 = vmatmul.msk.f32.gmra.mxu1 %vm1378_vm0, %v1325_v23 }
 0x1b5   : > { %2505 = vmatmul.msk.f32.gmra.mxu1 %vm1378_vm0, %v1326_v24  ;;  %v1361_v24 = vpop.permute.xlu1 %1360 }
 0x1bd   : > { %2506 = vmatmul.msk.f32.gmra.mxu1 %vm1378_vm0, %v1327_v25  ;;  %v1376_v37 = vpop.permute.xlu1 %1375 }
 0x1c5   : > { %2507 = vmatmul.msk.f32.gmra.mxu1 %vm1378_vm0, %v1328_v26  ;;  %v1366_v26 = vpop.permute.xlu2 %1365 }
 0x1cd   : > { %2508 = vmatmul.msk.f32.gmra.mxu1 %vm1378_vm0, %v1329_v29 }
 0x1e6   : > { %v1844_v21 = vpop.f32.mrf.mxu3 }
 0x1e7   : > { %1972 = vst.msk [vmem:[%s3490_s19] sm:$0xff] %vm1971_vm8, %v1844_v21 }
 0x1ee   : > { %v1846_v55 = vpop.f32.mrf.mxu3 }
 0x1ef   : > { %1973 = vst.msk [vmem:[%s3490_s19 + $0x8] sm:$0xff] %vm1971_vm8, %v1846_v55 }
 0x1f6   : > { %v1849_v46 = vpop.f32.mrf.mxu3 }
 0x1f7   : > { %1974 = vst.msk [vmem:[%s3490_s19 + $0x10] sm:$0xff] %vm1971_vm8, %v1849_v46 }
 0x1fe   : > { %v1851_v9 = vpop.f32.mrf.mxu3 }
 0x1ff   : > { %1975 = vst.msk [vmem:[%s3490_s19 + $0x18] sm:$0xff] %vm1971_vm8, %v1851_v9  ;;  %2001 = vmatpush.msra.mxu0 %v1851_v9  ;;  %v2581_v9 = vld [vmem:[%s3671_s2 + $0x28] sm:$0xf0] }
 0x201   : > { %2002 = vmatpush.msra.mxu0 %v1849_v46  ;;  %v2009_v46 = vld [vmem:[%s3672_s0] sm:$0x7] }
 0x203   : > { %2003 = vmatpush.msra.mxu0 %v1846_v55  ;;  %v2580_v55 = vor.u32 %v2618_v52, %v2579_v49 }
 0x205   : > { %2004 = vmatpush.msra.mxu0 %v1844_v21  ;;  %2090 = vmatpush.bf16.msrb.mxu2 %v2580_v55 }
 0x206   : > { %2559 = vmatmul.msk.f32.vlgmr.msra.gmra.mxu0 %vm1378_vm0, %v1985_v50  ;;  %vm2211_vm0 = vcmask 1043456  }
 0x209   : > { %2091 = vmatpush.bf16.msrb.mxu2 %v2572_v61 }
 0x20d   : > { %2092 = vmatpush.bf16.msrb.mxu2 %v2564_v1 }
 0x212   : > { %v1420_v32 = vpop.f32.mrf.mxu1 }
 0x213   : > { %v1421_v27 = vadd.f32 %v1420_v32, %v1341_v20  ;;  %v2615_v20 = vld [vmem:[%s3671_s2 + $0x14] sm:$0xf] }
 0x215   : > { %v1444_v13 = vmax.f32 %v1421_v27, 0.0  ;;  %v2573_v27 = vld [vmem:[%s3671_s2 + $0x18] sm:$0xf0] }
 0x21a   : > { %v1423_v4 = vpop.f32.mrf.mxu1 }
 0x21b   : > { %v1424_v19 = vadd.f32 %v1423_v4, %v1346_v3  ;;  %v2576_v3 = vor.u32 %v2615_v20, %v2573_v27  ;;  %v2613_v4 = vld [vmem:[%s3671_s2 + $0x4] sm:$0xf] }
 0x21d   : > { %v1445_v41 = vmax.f32 %v1424_v19, 0.0  ;;  %v2565_v19 = vld [vmem:[%s3671_s2 + $0x8] sm:$0xf0] }
 0x21f   : > { %v1910_v51 = vpack.c.bf16 %v1445_v41, %v1444_v13  ;;  %v2568_v13 = vor.u32 %v2613_v4, %v2565_v19 }
 0x221   : > { %2555 = vmatmul.msk.bf16.vlgmr.msrb.gmra.mxu3 %vm1922_vm6, %v1910_v51 }
 0x222   : > { %v1426_v22 = vpop.f32.mrf.mxu1 }
 0x223   : > { %v1427_v30 = vadd.f32 %v1426_v22, %v1351_v54  ;;  %v2599_v22 = vld [vmem:[%s3674_s28] sm:$0xf]  ;;  %v2622_v54 = vld [vmem:[%s3674_s28 + $0x4] sm:$0xf0] }
 0x225   : > { %v1446_v15 = vmax.f32 %v1427_v30, 0.0  ;;  %v2621_v30 = vld [vmem:[%s3674_s28 + $0x4] sm:$0xf] }
 0x22a   : > { %v1429_v5 = vpop.f32.mrf.mxu1 }
 0x22b   : > { %v1430_v14 = vadd.f32 %v1429_v5, %v1356_v45  ;;  %v2600_v45 = vor.u32 %v2622_v54, %v2599_v22  ;;  %v2601_v5 = vld [vmem:[%s3674_s28 + $0x8] sm:$0xf0] }
 0x22d   : > { %v1447_v17 = vmax.f32 %v1430_v14, 0.0  ;;  %v2604_v14 = vor.u32 %v2621_v30, %v2601_v5  ;;  %2177 = vmatpush.bf16.msra.mxu2 %v2600_v45 }
 0x22f   : > { %v1911_v18 = vpack.c.bf16 %v1447_v17, %v1446_v15 }
 0x231   : > { %2556 = vmatmul.msk.bf16.gmra.mxu3 %vm1922_vm6, %v1911_v18 }
 0x232   : > { %v1432_v23 = vpop.f32.mrf.mxu1 }
 0x233   : > { %v1433_v25 = vadd.f32 %v1432_v23, %v1361_v24 }
 0x235   : > { %v1448_v47 = vmax.f32 %v1433_v25, 0.0 }
 0x23a   : > { %v1435_v29 = vpop.f32.mrf.mxu1 }
 0x23b   : > { %v1436_v31 = vadd.f32 %v1435_v29, %v1366_v26 }
 0x23d   : > { %v1449_v16 = vmax.f32 %v1436_v31, 0.0 }
 0x23f   : > { %v1912_v35 = vpack.c.bf16 %v1449_v16, %v1448_v47 }
 0x241   : > { %2557 = vmatmul.msk.bf16.gmra.mxu3 %vm1922_vm6, %v1912_v35  ;;  %v2202_v35 = vpop.permute.xlu2 %2201 }
 0x242   : > { %v1438_v8 = vpop.f32.mrf.mxu1 }
 0x243   : > { %v1439_v33 = vadd.f32 %v1438_v8, %v1371_v36 }
 0x245   : > { %v1450_v58 = vmax.f32 %v1439_v33, 0.0 }
 0x24a   : > { %v1441_v34 = vpop.f32.mrf.mxu1 }
 0x24b   : > { %v1442_v10 = vadd.f32 %v1441_v34, %v1376_v37 }
 0x24d   : > { %v1451_v12 = vmax.f32 %v1442_v10, 0.0 }
 0x24f   : > { %v1913_v11 = vpack.c.bf16 %v1451_v12, %v1450_v58 }
 0x251   : > { %2558 = vmatmul.msk.bf16.gmra.mxu3 %vm1922_vm6, %v1913_v11 }
 0x283   : > { %v2006_v41 = vpop.f32.mrf.mxu0 }
 0x284   : > { %v2033_v51 = vpack.c.bf16 %v2006_v41, %v2006_v41 }
 0x286   : > { %2593 = vmatmul.msk.bf16.vlgmr.msrb.gmra.mxu2 %vm1971_vm8, %v2033_v51 }
 0x2a4   : > { %v1947_v6 = vpop.f32.mrf.mxu3 }
 0x2a5   : > { %1976 = vst.msk [vmem:[%s883_s29] sm:$0xff] %vm1157_vm15, %v1947_v6 }
 0x2ac   : > { %v1949_v40 = vpop.f32.mrf.mxu3 }
 0x2ad   : > { %1977 = vst.msk [vmem:[%s883_s29 + $0x8] sm:$0xff] %vm1157_vm15, %v1949_v40 }
 0x2b4   : > { %v1952_v42 = vpop.f32.mrf.mxu3 }
 0x2b5   : > { %1978 = vst.msk [vmem:[%s883_s29 + $0x10] sm:$0xff] %vm1157_vm15, %v1952_v42 }
 0x2bc   : > { %v1954_v21 = vpop.f32.mrf.mxu3 }
 0x2bd   : > { %1979 = vst.msk [vmem:[%s883_s29 + $0x18] sm:$0xff] %vm1157_vm15, %v1954_v21 }
 0x2c4   : > { %v1957_v43 = vpop.f32.mrf.mxu3 }
 0x2c5   : > { %1980 = vst.msk [vmem:[%s883_s29 + $0x20] sm:$0xff] %vm1157_vm15, %v1957_v43 }
 0x2cc   : > { %v1959_v7 = vpop.f32.mrf.mxu3 }
 0x2cd   : > { %1981 = vst.msk [vmem:[%s883_s29 + $0x28] sm:$0xff] %vm1157_vm15, %v1959_v7 }
 0x2d4   : > { %v1962_v53 = vpop.f32.mrf.mxu3 }
 0x2d5   : > { %1982 = vst.msk [vmem:[%s883_s29 + $0x30] sm:$0xff] %vm1157_vm15, %v1962_v53 }
 0x2dc   : > { %v1964_v38 = vpop.f32.mrf.mxu3 }
 0x2dd   : > { %1983 = vst.msk [vmem:[%s883_s29 + $0x38] sm:$0xff] %vm1157_vm15, %v1964_v38  ;;  %2021 = vmatpush.msrb.mxu1 %v1964_v38 }
 0x2df   : > { %2022 = vmatpush.msrb.mxu1 %v1962_v53 }
 0x2e1   : > { %2023 = vmatpush.msrb.mxu1 %v1959_v7 }
 0x2e3   : > { %2024 = vmatpush.msrb.mxu1 %v1957_v43 }
 0x2e5   : > { %2025 = vmatpush.msrb.mxu1 %v1954_v21 }
 0x2e7   : > { %2026 = vmatpush.msrb.mxu1 %v1952_v42 }
 0x2e9   : > { %2027 = vmatpush.msrb.mxu1 %v1949_v40 }
 0x2eb   : > { %2028 = vmatpush.msrb.mxu1 %v1947_v6 }
 0x2ec   : > { %2560 = vmatmul.msk.f32.vlgmr.msrb.gmra.mxu1 %vm1971_vm8, %v2009_v46 }
 0x2ed   : > { %2128 = vmatpush.msra.mxu1 %v3442_v48  ;;  %v2617_v48 = vld [vmem:[%s3671_s2 + $0x24] sm:$0xf] }
 0x2ee   : > { %v2584_v32 = vor.u32 %v2617_v48, %v2581_v9 }
 0x2ef   : > { %2129 = vmatpush.msra.mxu1 %v3434_v60  ;;  %v2589_v60 = vld [vmem:[%s3671_s2 + $0x38] sm:$0xf0] }
 0x2f1   : > { %2148 = vmatpush.msrb.mxu1 %v3428_v56  ;;  %v2592_v56 = vor.u32 %v2619_v0, %v2589_v60 }
 0x2f3   : > { %2149 = vmatpush.msrb.mxu1 %v3424_v44  ;;  %v1984_v44 = vld [vmem:[%s3673_s3] sm:$0x7]  ;;  %2102 = vmatpush.bf16.msrb.mxu0 %v2592_v56 }
 0x2f4   : > { %2595 = vmatmul.msk.f32.vlgmr.msra.gmra.mxu1 %vm1157_vm15, %v1984_v44 }
 0x2f5   : > { %2190 = vmatpush.bf16.msra.mxu1 %v2604_v14 }
 0x2f7   : > { %2103 = vmatpush.bf16.msrb.mxu0 %v2584_v32 }
 0x2fb   : > { %2104 = vmatpush.bf16.msrb.mxu0 %v2576_v3 }
 0x2fc   : > { %2596 = vmatmul.msk.f32.vlgmr.msrb.gmra.mxu1 %vm1157_vm15, %v1984_v44 }
 0x2ff   : > { %2105 = vmatpush.bf16.msrb.mxu0 %v2568_v13 }
 0x302   : > { %2594 = vmatmul.msk.bf16.vlgmr.msrb.gmra.mxu0 %vm1971_vm8, %v2033_v51 }
 0x309   : > { %v2094_v23 = vpop.f32.mrf.mxu2 }
 0x311   : > { %v2096_v25 = vpop.f32.mrf.mxu2 }
 0x369   : > { %v2030_v15 = vpop.f32.mrf.mxu1 }
 0x36a   : > { %v2154_v17 = vpack.c.bf16 %v2030_v15, %v2030_v15 }
 0x36c   : > { %2605 = vmatmul.msk.bf16.vlgmr.msra.gmra.mxu2 %vm1157_vm15, %v2154_v17  ;;  %2606 = vmatmul.msk.bf16.vlgmr.msra.gmra.mxu1 %vm1157_vm15, %v2154_v17 }
 0x371   : > { %v2131_v26 = vpop.f32.mrf.mxu1 }
 0x372   : > { %v2132_v36 = vadd.f32 %v2131_v26, %v2094_v23 }
 0x379   : > { %v2151_v29 = vpop.f32.mrf.mxu1 }
 0x37f   : > { %v2107_v18 = vpop.f32.mrf.mxu0 }
 0x380   : > { %v2152_v31 = vadd.f32 %v2151_v29, %v2107_v18 }
 0x387   : > { %v2109_v24 = vpop.f32.mrf.mxu0 }
 0x3e9   : > { %v2192_v47 = vpop.f32.mrf.mxu1 }
 0x3ea   : > { %v2197_v16 = vadd.f32 %v2192_v47, %v2152_v31 }
 0x3ec   : > { %v2205_v8 = vadd.f32 %v2202_v35, %v2197_v16 }
 0x3ee   : > { %2676 = vtanh.f32 %v2205_v8 }
 0x3ef   : > { %v2179_v33 = vpop.f32.mrf.mxu2 }
 0x3f0   : > { %v2196_v37 = vadd.f32 %v2179_v33, %v2132_v36 }
 0x3f1   : > { %v2194_v34 = vpop.f32.mrf.mxu1 }
 0x3f2   : > { %v2204_v10 = vadd.f32 %v2202_v35, %v2196_v37 }
 0x3f4   : > { %2678 = vtanh.f32 %v2204_v10  ;;  %v2677_v58 = vpop.eup %2676 }
 0x3f5   : > { %v2210_v11 = vrot.slane %v2677_v58, 4 }
 0x3f7   : > { %v2181_v12 = vpop.f32.mrf.mxu2 }
 0x3fa   : > { %v2679_v6 = vpop.eup %2678 }
 0x3fb   : > { %v2212_v40 = vsel %vm2211_vm0, %v2679_v6, %v2210_v11 }
 0x3fc   : > { %2214 = vst [vmem:[%s868_s21] sm:$0x77] %v2212_v40 }
 0x3fd PF: > { %s3676_s5 = sld [smem:[#allocation8_spill]] }
 0x403   : > { %s37_s5 = sadd.s32 1, %s3676_s5  }
 0x404   : > { %p34_p7 = scmp.ge.s32.totalorder %s37_s5, 4  }
 0x406   :  { %36 = sbr.rel (!%p34_p7) target bundleno = 17 (0x11), region = 194 }
 0x40b   :  { %2284 = vsyncpa [#allocation3], 1 }
 0x40c   :  { %2286 = vsyncpa [#allocation3 + $0x1], 1 }
 0x40d   :  { %2287 = vsyncpa [#allocation5], 1 }

</bundles_post_ra>
